<compile_context>
chip_gen: v6e
topology: v6e:2x2x1
jax: 0.10.0
libtpu: 0.0.40
codegen_flags: <defaults>
</compile_context>

<pallas_src>
from functools import partial
from math import prod

import jax
import jax.numpy as jnp
from jax.experimental import pallas as pl
from jax.experimental.pallas import tpu as pltpu


def _round_up(x, m):
    return ((x + m - 1) // m) * m


def _nufft_type2_kernel(trj_ref, x_ref, out_ref, *, im_size, B):
    """One (n, m-tile) grid step of the direct type-2 NUFFT.

    trj_ref : (1, d, TM)  f32, radians
    x_ref   : (1, 2B, P)  f32, rows [0,B)=Re(img), [B,2B)=Im(img)
    out_ref : (1, 2B, TM) f32, rows [0,B)=Re(ksp), [B,2B)=Im(ksp)
    """
    TM = trj_ref.shape[-1]

    # Factorized phasor: exp(-i k.x) = prod_d (cos(k_d x_d) - i sin(k_d x_d)).
    # Transcendentals: sum_d Nd * TM instead of P * TM; recombination is VPU.
    wr = None
    wi = None
    for dd, nd in enumerate(im_size):
        kidx = jax.lax.broadcasted_iota(jnp.int32, (nd, TM), 0)
        ang = (kidx.astype(jnp.float32) - float(nd // 2)) * trj_ref[0, dd:dd + 1, :]
        c = jnp.cos(ang)                                   # (Nd, TM)
        s = jnp.sin(ang)
        if wr is None:
            wr, wi = c, -s
        else:
            p_prev = wr.shape[0]
            a, b = wr[:, None, :], wi[:, None, :]          # (P_prev, 1, TM)
            cc, ss = c[None, :, :], s[None, :, :]          # (1, Nd, TM)
            # (a + i b) * (c - i s)
            wr = (a * cc + b * ss).reshape(p_prev * nd, TM)
            wi = (b * cc - a * ss).reshape(p_prev * nd, TM)

    # Single fused MXU call: X (2B, P) @ [Wr | Wi] (P, 2TM) -> (2B, 2TM)
    w = jnp.concatenate([wr, wi], axis=-1)
    y = jnp.dot(x_ref[0], w, preferred_element_type=jnp.float32)

    # ksp = (ir + i*ii) @ (Wr + i*Wi)
    out_ref[0, :B, :] = y[:B, :TM] - y[B:, TM:]            # Re(ksp)
    out_ref[0, B:, :] = y[:B, TM:] + y[B:, :TM]            # Im(ksp)


def _vmem_bytes_estimate(B, P, TM, d):
    # double-buffered input/output blocks + in-kernel phasor intermediates
    io = 2 * (2 * B * P + d * TM + 2 * B * TM) * 4
    interm = (4 * P * TM + 4 * B * TM) * 4                 # wr, wi, concat w, y
    return io + interm


def cufi_nufft_forward(img, trj, im_size, eps=1e-4, tm=256):
    """img: complex (N, *img_batch, *im_size); trj: float (N, *trj_batch, d),
    coordinates in radians (post rescale_trajectory)."""
    del eps  # exact direct DFT: always within cufinufft tolerance
    d = trj.shape[-1]
    assert d == len(im_size), "trajectory dim must match len(im_size)"
    N = trj.shape[0]
    trj_batch = trj.shape[1:-1]
    M = int(prod(trj_batch)) if trj_batch else 1
    img_batch = img.shape[1:-d]
    B = int(prod(img_batch)) if img_batch else 1
    P = int(prod(im_size))

    TM = min(_round_up(max(tm, 128), 128), _round_up(M, 128))
    M_pad = _round_up(M, TM)

    # Stacked real/imag image: (N, 2B, P).
    img_flt = img.reshape(N, B, P)
    x = jnp.concatenate(
        [jnp.real(img_flt), jnp.imag(img_flt)], axis=1).astype(jnp.float32)

    # Trajectory as (N, d, M_pad): point axis on lanes, true d (no 128 pad).
    trj_flt = trj.reshape(N, M, d).astype(jnp.float32)
    if M_pad != M:
        trj_flt = jnp.pad(trj_flt, ((0, 0), (0, M_pad - M), (0, 0)))
    trj_t = jnp.swapaxes(trj_flt, 1, 2)

    kernel = partial(_nufft_type2_kernel, im_size=tuple(im_size), B=B)

    cp_kwargs = dict(dimension_semantics=("parallel", "parallel"))
    est = _vmem_bytes_estimate(B, P, TM, d)
    if est > 24 * 1024 * 1024:
        cp_kwargs["vmem_limit_bytes"] = min(2 * est, 96 * 1024 * 1024)

    out = pl.pallas_call(
        kernel,
        out_shape=jax.ShapeDtypeStruct((N, 2 * B, M_pad), jnp.float32),
        grid_spec=pltpu.PrefetchScalarGridSpec(
            num_scalar_prefetch=0,
            grid=(N, M_pad // TM),
            in_specs=[
                pl.BlockSpec((1, d, TM), lambda n, m: (n, 0, m)),      # trj tile
                pl.BlockSpec((1, 2 * B, P), lambda n, m: (n, 0, 0)),   # img re/im
            ],
            out_specs=pl.BlockSpec((1, 2 * B, TM), lambda n, m: (n, 0, m)),
        ),
        compiler_params=pltpu.CompilerParams(**cp_kwargs),
    )(trj_t, x)

    ksp = (out[:, :B, :M] + 1j * out[:, B:, :M]).astype(jnp.complex64)
    return ksp.reshape(N, *img_batch, *trj_batch)


if __name__ == "__main__":
    key = jax.random.PRNGKey(0)
    N, C = 2, 4                    # batch N, img_batch = (C,)
    im_size = (8, 16)              # 2D NUFFT
    M = 200                        # number of trajectory points (ragged vs TM)
    d = len(im_size)

    k1, k2, k3 = jax.random.split(key, 3)
    img = (jax.random.normal(k1, (N, C, *im_size), jnp.float32)
           + 1j * jax.random.normal(k2, (N, C, *im_size), jnp.float32)
           ).astype(jnp.complex64)
    # trajectory already in radians (post rescale_trajectory): [-pi, pi)
    trj = jax.random.uniform(k3, (N, M, d), jnp.float32,
                             minval=-jnp.pi, maxval=jnp.pi)

    ksp = jax.block_until_ready(cufi_nufft_forward(img, trj, im_size, eps=1e-4))

    # pure-JAX reference (direct type-2 NUFFT, isign=-1)
    axes = [jnp.arange(n, dtype=jnp.float32) - (n // 2) for n in im_size]
    mesh = jnp.meshgrid(*axes, indexing="ij")
    kgrid = jnp.stack([m.reshape(-1) for m in mesh], axis=-1)       # (P, d)
    phase = jnp.einsum("pd,nmd->npm", kgrid, trj, precision="highest")
    w = jnp.exp(-1j * phase).astype(jnp.complex64)
    ksp_ref = jnp.einsum("nbp,npm->nbm", img.reshape(N, C, -1), w,
                         precision="highest").reshape(N, C, M)

    assert ksp.shape == (N, C, M) and ksp.dtype == jnp.complex64
    rel_err = jnp.max(jnp.abs(ksp - ksp_ref)) / jnp.max(jnp.abs(ksp_ref))
    assert float(rel_err) < 2e-3, f"max relative error {float(rel_err)}"
    print("KERNEL_OK")
</pallas_src>

<mosaic_0001>
module attributes {stable_mosaic.version = 11 : i64} {
  func.func @_nufft_type2_kernel(%arg0: i32, %arg1: i32, %arg2: memref<1x2x256xf32, #tpu.memory_space<vmem>>, %arg3: memref<1x8x128xf32, #tpu.memory_space<vmem>>, %arg4: memref<1x8x256xf32, #tpu.memory_space<vmem>>) attributes {dimension_semantics = [#tpu.dimension_semantics<parallel>, #tpu.dimension_semantics<parallel>], iteration_bounds = array<i64: 2, 1>, scalar_prefetch = 0 : i64, scratch_operands = 0 : i64, tpu.core_type = #tpu.core_type<tc>, window_params = [{transform_indices = @transform_0, window_bounds = array<i64: 1, 2, 256>}, {transform_indices = @transform_1, window_bounds = array<i64: 1, 8, 128>}, {transform_indices = @transform_2, window_bounds = array<i64: 1, 8, 256>}]} {
    %0 = tpu.iota {dimensions = array<i32: 0>} : vector<8x256xi32>
    %1 = arith.sitofp %0 : vector<8x256xi32> to vector<8x256xf32>
    %cst = arith.constant 4.000000e+00 : f32
    %2 = vector.broadcast %cst : f32 to vector<8x256xf32>
    %3 = arith.subf %1, %2 : vector<8x256xf32>
    %c0 = arith.constant 0 : index
    %c0_0 = arith.constant 0 : index
    %c0_1 = arith.constant 0 : index
    %4 = vector.load %arg2[%c0, %c0_0, %c0_1] : memref<1x2x256xf32, #tpu.memory_space<vmem>>, vector<1x1x256xf32>
    %5 = vector.shape_cast %4 : vector<1x1x256xf32> to vector<1x256xf32>
    %6 = vector.broadcast %5 : vector<1x256xf32> to vector<8x256xf32>
    %7 = arith.mulf %3, %6 : vector<8x256xf32>
    %8 = math.cos %7 : vector<8x256xf32>
    %9 = math.sin %7 : vector<8x256xf32>
    %cst_2 = arith.constant 0.000000e+00 : f32
    %10 = vector.broadcast %cst_2 : f32 to vector<8x256xf32>
    %11 = arith.subf %10, %9 : vector<8x256xf32>
    %12 = tpu.iota {dimensions = array<i32: 0>} : vector<16x256xi32>
    %13 = arith.sitofp %12 : vector<16x256xi32> to vector<16x256xf32>
    %cst_3 = arith.constant 8.000000e+00 : f32
    %14 = vector.broadcast %cst_3 : f32 to vector<16x256xf32>
    %15 = arith.subf %13, %14 : vector<16x256xf32>
    %c0_4 = arith.constant 0 : index
    %c1 = arith.constant 1 : index
    %c0_5 = arith.constant 0 : index
    %16 = vector.load %arg2[%c0_4, %c1, %c0_5] : memref<1x2x256xf32, #tpu.memory_space<vmem>>, vector<1x1x256xf32>
    %17 = vector.shape_cast %16 : vector<1x1x256xf32> to vector<1x256xf32>
    %18 = vector.broadcast %17 : vector<1x256xf32> to vector<16x256xf32>
    %19 = arith.mulf %15, %18 : vector<16x256xf32>
    %20 = math.cos %19 : vector<16x256xf32>
    %21 = math.sin %19 : vector<16x256xf32>
    %22 = vector.shape_cast %8 : vector<8x256xf32> to vector<8x1x256xf32>
    %23 = vector.shape_cast %11 : vector<8x256xf32> to vector<8x1x256xf32>
    %24 = vector.shape_cast %20 : vector<16x256xf32> to vector<1x16x256xf32>
    %25 = vector.shape_cast %21 : vector<16x256xf32> to vector<1x16x256xf32>
    %26 = vector.broadcast %22 : vector<8x1x256xf32> to vector<8x16x256xf32>
    %27 = vector.broadcast %24 : vector<1x16x256xf32> to vector<8x16x256xf32>
    %28 = arith.mulf %26, %27 : vector<8x16x256xf32>
    %29 = vector.broadcast %23 : vector<8x1x256xf32> to vector<8x16x256xf32>
    %30 = vector.broadcast %25 : vector<1x16x256xf32> to vector<8x16x256xf32>
    %31 = arith.mulf %29, %30 : vector<8x16x256xf32>
    %32 = arith.addf %28, %31 : vector<8x16x256xf32>
    %33 = vector.shape_cast %32 : vector<8x16x256xf32> to vector<128x256xf32>
    %34 = vector.broadcast %23 : vector<8x1x256xf32> to vector<8x16x256xf32>
    %35 = vector.broadcast %24 : vector<1x16x256xf32> to vector<8x16x256xf32>
    %36 = arith.mulf %34, %35 : vector<8x16x256xf32>
    %37 = vector.broadcast %22 : vector<8x1x256xf32> to vector<8x16x256xf32>
    %38 = vector.broadcast %25 : vector<1x16x256xf32> to vector<8x16x256xf32>
    %39 = arith.mulf %37, %38 : vector<8x16x256xf32>
    %40 = arith.subf %36, %39 : vector<8x16x256xf32>
    %41 = vector.shape_cast %40 : vector<8x16x256xf32> to vector<128x256xf32>
    %42 = tpu.concatenate %33, %41 in 1 : vector<128x256xf32>, vector<128x256xf32> -> vector<128x512xf32>
    %c0_6 = arith.constant 0 : index
    %c0_7 = arith.constant 0 : index
    %c0_8 = arith.constant 0 : index
    %43 = vector.load %arg3[%c0_6, %c0_7, %c0_8] : memref<1x8x128xf32, #tpu.memory_space<vmem>>, vector<1x8x128xf32>
    %44 = vector.shape_cast %43 : vector<1x8x128xf32> to vector<8x128xf32>
    %cst_9 = arith.constant dense<0.000000e+00> : vector<8x512xf32>
    %45 = tpu.matmul %44, %42, %cst_9 {dimension_numbers = #tpu.dot_dimension_numbers<[1], [0], [0], [1], [0, 0, 1, 1], [], []>} : vector<8x128xf32>, vector<128x512xf32>, vector<8x512xf32> -> vector<8x512xf32>
    %46 = vector.extract_strided_slice %45 {offsets = [0, 0], sizes = [4, 256], strides = [1, 1]} : vector<8x512xf32> to vector<4x256xf32>
    %47 = vector.extract_strided_slice %45 {offsets = [4, 256], sizes = [4, 256], strides = [1, 1]} : vector<8x512xf32> to vector<4x256xf32>
    %48 = arith.subf %46, %47 : vector<4x256xf32>
    %c0_10 = arith.constant 0 : index
    %c0_11 = arith.constant 0 : index
    %c0_12 = arith.constant 0 : index
    %49 = vector.load %arg4[%c0_10, %c0_11, %c0_12] : memref<1x8x256xf32, #tpu.memory_space<vmem>>, vector<1x4x256xf32>
    %50 = vector.shape_cast %49 : vector<1x4x256xf32> to vector<4x256xf32>
    %51 = vector.shape_cast %48 : vector<4x256xf32> to vector<1x4x256xf32>
    tpu.vector_store %arg4[%c0_10, %c0_11, %c0_12], %51 {strides = array<i32>} : memref<1x8x256xf32, #tpu.memory_space<vmem>>, vector<1x4x256xf32>,
    %52 = vector.extract_strided_slice %45 {offsets = [0, 256], sizes = [4, 256], strides = [1, 1]} : vector<8x512xf32> to vector<4x256xf32>
    %53 = vector.extract_strided_slice %45 {offsets = [4, 0], sizes = [4, 256], strides = [1, 1]} : vector<8x512xf32> to vector<4x256xf32>
    %54 = arith.addf %52, %53 : vector<4x256xf32>
    %c0_13 = arith.constant 0 : index
    %c4 = arith.constant 4 : index
    %c0_14 = arith.constant 0 : index
    %55 = vector.load %arg4[%c0_13, %c4, %c0_14] : memref<1x8x256xf32, #tpu.memory_space<vmem>>, vector<1x4x256xf32>
    %56 = vector.shape_cast %55 : vector<1x4x256xf32> to vector<4x256xf32>
    %57 = vector.shape_cast %54 : vector<4x256xf32> to vector<1x4x256xf32>
    tpu.vector_store %arg4[%c0_13, %c4, %c0_14], %57 {strides = array<i32>} : memref<1x8x256xf32, #tpu.memory_space<vmem>>, vector<1x4x256xf32>,
    return
  }
  func.func @transform_0(%arg0: i32, %arg1: i32) -> (i32, i32, i32) {
    %c0_i32 = arith.constant 0 : i32
    %c0_i32_0 = arith.constant 0 : i32
    return %arg0, %c0_i32, %arg1 : i32, i32, i32
  }
  func.func @transform_1(%arg0: i32, %arg1: i32) -> (i32, i32, i32) {
    %c0_i32 = arith.constant 0 : i32
    %c0_i32_0 = arith.constant 0 : i32
    %c0_i32_1 = arith.constant 0 : i32
    return %arg0, %c0_i32, %c0_i32_0 : i32, i32, i32
  }
  func.func @transform_2(%arg0: i32, %arg1: i32) -> (i32, i32, i32) {
    %c0_i32 = arith.constant 0 : i32
    %c0_i32_0 = arith.constant 0 : i32
    return %arg0, %c0_i32, %arg1 : i32, i32, i32
  }
}

</mosaic_0001>

<bundles_post_ra>
// kernel: tpu_custom_call.1
= control target key start
LH: loop header
LB: loop body
LE: loop exit
PB: predicated region body
PF: predicated region fallthrough
CT: control target
= control target key end

     0   :  { %7 = vsyncpa [#allocation3], 0  ;;  %s3942_s0 = inlined_call_operand.hbm [shape: f32[2,2,256], index: 0, kind: input, shape index: {}]   ;;  %s3943_s1 = inlined_call_operand.hbm [shape: f32[2,8,128], index: 1, kind: input, shape index: {}]   ;;  %s3944_s2 = inlined_call_operand.hbm [shape: f32[2,8,256], index: 2, kind: output, shape index: {}]  }
   0x1   :  { %9 = vsyncpa [#allocation3 + $0x1], 0 }
   0x2   :  { %10 = vsyncpa [#allocation6], 0 }
   0x3   :  { %12 = vsyncpa [#allocation6 + $0x1], 0 }
   0x4   :  { %13 = vsyncpa [#allocation4], 0 }
   0x5   :  { %15 = vsyncpa [#allocation4 + $0x1], 0  ;;  %s2612_s9 = smov 0   ;;  %s2614_s10 = smov 0  }
   0x6   :  { %s2616_s11 = smov 0   ;;  %s2618_s12 = smov 0  }
   0x7   :  { %s2620_s13 = smov 0   ;;  %s2622_s14 = smov 0  }
   0x8 LB: > { %s2249_s15 = sadd.s32 4294967295, %s2584_s14   ;;  %s2250_s16 = sadd.s32 4294967294, %s2584_s14   ;;  %s2584_s14 = sphi %s2622_s14, %s21_s14   ;;  %s2580_s13 = sphi %s2620_s13, %s4046_s13   ;;  %s2576_s12 = sphi %s2618_s12, %s4045_s12   ;;  %s2572_s11 = sphi %s2616_s11, %s4044_s11   ;;  %s2568_s10 = sphi %s2614_s10, %s4043_s10   ;;  %s2564_s9 = sphi %s2612_s9, %s4042_s9  }
   0x9   : > { %s33_s17 = sadd.s32 1, %s2580_s13  ;;  %s42_s18 = sadd.s32 1, %s2572_s11 }
   0xa   : > { %p35_p0 = scmp.ge.s32.totalorder %s33_s17, 2  ;;  %p49_p1 = scmp.ne.s32.totalorder %s2572_s11, %s2568_s10 }
   0xb   : > { %p50_p2 = scmp.eq.s32.totalorder %s2584_s14, 0  ;;  %p55_p3 = scmp.ne.s32.totalorder %s2568_s10, %s2564_s9 }
   0xc   : > { %s4048_s17 = smov (%p35_p0, %s33_s17), 0  ;;  %p56_p5 = scmp.eq.s32.totalorder %s2249_s15, 0 }
   0xd   : > { %p2653_p4 = por %p50_p2, %p49_p1  ;;  %s37_s20 = ssub.s32 %s2580_s13, %s4048_s17 }
   0xe   : > { %p107_p6 = scmp.eq.s32.totalorder %s2249_s15, 1  ;;  %p40_p7 = scmp.eq.s32.totalorder %s37_s20, 0 }
   0xf   : > { %p2659_p8 = por %p56_p5, %p55_p3  ;;  %p113_p10 = scmp.eq.s32.totalorder %s2250_s16, 1 }
  0x10   : > { %p2663_p9 = por %p107_p6, %p49_p1  ;;  %p2362_p13 = scmp.lt.s32.totalorder %s2584_s14, 2 }
  0x11   : > { %s2668_s23 = scalar_select %p40_p7, %s2572_s11, %s42_s18  }
  0x12   : > { %p2670_p11 = por %p113_p10, %p55_p3  ;;  %s2677_s25 = sand.u32 1, %s2572_s11  }
  0x13   : > { %s2253_s26 = sshll.u32 %s2677_s25, 2  ;;  %s2319_s27 = sshll.u32 %s2580_s13, 6 }
  0x14   : > { %s145_s30 = scalar_lea.hbm %s3942_s0, %s2319_s27  ;;  %s137_s3 = scalar_lea.vmem [#allocation2], %s2253_s26 }
  0x15   : > { %s147_s4 = sshll.u32 %s137_s3, 4  ;;  %p2686_p0 = pnand %p2362_p13, %p2653_p4  ;;  %s148_s4 = int_to_ptr.vmem [resolvable:$true] %s147_s4 }
  0x16   : > { %p2258_p1 = scmp.ge.s32.totalorder %s2584_s14, 1  ;;  %p170_p2 = scmp.lt.s32.totalorder %s2584_s14, 3 }
  0x17   : > { %s134_s6 = scalar_lea.sflag [#allocation3], %s2677_s25  ;;  %p2446_p3 = pneg %p2686_p0 }
  0x18   : > { %s2457_s7 = scalar_lea.vmem %s148_s4, 64  ;;  %s2586_s8 = smov [#allocation2]  }
  0x19   : > { %p2458_p5 = scmp.ne.s32.totalorder %s148_s4, %s2457_s7  ;;  %s2462_s15 = sshll.u32 %s2586_s8, 4  ;;  %s2463_s15 = int_to_ptr.vmem [resolvable:$false] %s2462_s15 }
  0x1a   : > { %s2464_s16 = scalar_lea.vmem %s2463_s15, 128  ;;  %p2465_p4 = scmp.lt.s32.totalorder %s148_s4, %s2463_s15 }
  0x1b   : > { %p2460_p6 = pnand %p2458_p5, %p2446_p3  ;;  %p2466_p10 = scmp.lt.s32.totalorder %s2464_s16, %s2457_s7 }
  0x1d   : > { %p2461_p7 = pneg %p2460_p6  ;;  %p2467_p13 = por %p2466_p10, %p2465_p4 }
  0x1f   : > { %p2468_p12 = pnand %p2467_p13, %p2461_p7 }
  0x21   : > { %2471 = shalt.err (!%p2468_p12)
}
  0x22   : > { %2354 = dma.hbm_to_vmem [thread:$0]  (!%p2686_p0), %s145_s30, 64, %s148_s4, %s134_s6  }
  0x23   : > { %p2704_p5 = pnand %p2258_p1, %p170_p2  ;;  %s2256_s19 = sshll.u32 %s2677_s25, 3 }
  0x24   : > { %s2257_s20 = sshll.u32 %s2580_s13, 7  ;;  %s158_s29 = scalar_lea.vmem [#allocation5], %s2256_s19 }
  0x25   : > { %s163_s28 = scalar_lea.hbm %s3943_s1, %s2257_s20  ;;  %s165_s3 = sshll.u32 %s158_s29, 4  ;;  %s166_s3 = int_to_ptr.vmem [resolvable:$true] %s165_s3 }
  0x26   : > { %s155_s7 = scalar_lea.sflag [#allocation6], %s2677_s25  ;;  %s2485_s8 = scalar_lea.vmem %s166_s3, 128 }
  0x27   : > { %p2486_p12 = scmp.ne.s32.totalorder %s166_s3, %s2485_s8  ;;  %s2587_s30 = smov [#allocation5]  }
  0x28   : > { %s2490_s4 = sshll.u32 %s2587_s30, 4  ;;  %s2491_s4 = int_to_ptr.vmem [resolvable:$false] %s2490_s4 }
  0x29   : > { %p2488_p6 = pnand %p2486_p12, %p2446_p3  ;;  %s2492_s6 = scalar_lea.vmem %s2491_s4, 256 }
  0x2a   : > { %p2493_p1 = scmp.lt.s32.totalorder %s166_s3, %s2491_s4  ;;  %p2494_p2 = scmp.lt.s32.totalorder %s2492_s6, %s2485_s8 }
  0x2b   : > { %p2489_p7 = pneg %p2488_p6 }
  0x2c   : > { %p2495_p4 = por %p2494_p2, %p2493_p1 }
  0x2e   : > { %p2496_p10 = pnand %p2495_p4, %p2489_p7 }
  0x30   : > { %2499 = shalt.err (!%p2496_p10)
}
  0x31   : > { %2357 = dma.hbm_to_vmem [thread:$0]  (!%p2686_p0), %s163_s28, 128, %s166_s3, %s155_s7  }
  0x32   : > { %174 = sbr.rel (%p2704_p5) target bundleno = 526 (0x20e), region = 28 }
  0x37   : > { %s2722_s25 = sand.u32 1, %s2568_s10  }
  0x38   : > { %s2259_s15 = sshll.u32 %s2722_s25, 2  ;;  %s177_s16 = scalar_lea.sflag [#allocation3], %s2722_s25 }
  0x39   : > { %s180_s19 = scalar_lea.vmem [#allocation2], %s2259_s15 }
  0x3a   : > { %2551 = dma.done.wait (%p2659_p8), %s177_s16, 64  }
  0x3b   : > { %2553 = vsyncadd (%p2659_p8), %s177_s16, 4294967232  ;;  %s2260_s5 = sshll.u32 %s2722_s25, 3  ;;  %s186_s18 = scalar_lea.sflag [#allocation6], %s2722_s25 }
  0x3c   : > { %s2732_s20 = scalar_lea.vmem [#allocation5], %s2260_s5 }
  0x3d   : > { %2555 = dma.done.wait (%p2659_p8), %s186_s18, 128  }
  0x3e   : > { %2557 = vsyncadd (%p2659_p8), %s186_s18, 4294967168  ;;  %v217_v0 = vlaneseq  ;;  %v221_v7 = vld [vmem:[%s180_s19] ss:$2 sm:$0x3]  ;;  %v2588_v42 = vmov 683565275  }
  0x3f   : > { %v2281_v8 = vld [vmem:[%s180_s19 + $0x1] ss:$2 sm:$0x3]  ;;  %v2589_v44 = vmov 2475754826   ;;  %s2261_s21 = sshll.u32 %s2722_s25, 4 }
  0x40   : > { %v2738_v1 = vshrl.u32 %v217_v0, 7  ;;  %v2590_v46 = vmov 2131351028   ;;  %v2591_v48 = vmov 2102212464   ;;  %s2320_s26 = sshll.u32 %s2576_s12, 8 }
  0x41   : > { %v2592_v50 = vmov 920167782   ;;  %v2593_v58 = vmov 1326507024   ;;  %s214_s27 = scalar_lea.vmem [#allocation7], %s2261_s21  ;;  %s3900_s7 = scalar_lea.hbm %s3944_s2, %s2320_s26 }
  0x42   : > { %v219_v2 = vcvt.s32.f32 %v2738_v1  ;;  %v2742_v3 = vsub.s32 0, %v2738_v1  ;;  %v2745_v4 = vsub.s32 1, %v2738_v1  ;;  %s2142_s28 = sshll.u32 %s214_s27, 4  ;;  %s2126_s8 = scalar_lea.sflag [#allocation4], %s2722_s25  ;;  %s2143_s28 = int_to_ptr.vmem [resolvable:$true] %s2142_s28 }
  0x43   : > { %s2500_s30 = scalar_lea.vmem %s2143_s28, 256  ;;  %s2596_s12 = smov [#allocation7]  }
  0x44   : > { %3971 = vst [vmem:[#allocation11_spill] sm:$0xff] %v2745_v4  ;;  %v2262_v5 = vadd.f32 -4.0, %v219_v2  ;;  %v2747_v6 = vadd.f32 -8.0, %v219_v2  ;;  %v226_v9 = vrot.slane %v221_v7, %v2742_v3  ;;  %v230_v10 = vrot.slane %v221_v7, %v2745_v4  ;;  %p2501_p8 = scmp.ne.s32.totalorder %s2143_s28, %s2500_s30  ;;  %s2504_s4 = sshll.u32 %s2596_s12, 4  ;;  %s2505_s4 = int_to_ptr.vmem [resolvable:$false] %s2504_s4 }
  0x45   : > { %v2752_v11 = vrot.slane %v2281_v8, %v2742_v3  ;;  %v2772_v36 = vrot.slane %v2281_v8, %v2745_v4  ;;  %s2506_s6 = scalar_lea.vmem %s2505_s4, 512  ;;  %p2507_p13 = scmp.lt.s32.totalorder %s2143_s28, %s2505_s4 }
  0x46   : > { %v2754_v12 = vmul.f32 %v2262_v5, %v226_v9  ;;  %v2756_v13 = vmul.f32 %v2262_v5, %v230_v10  ;;  %p2502_p0 = pnand %p2501_p8, %p2663_p9  ;;  %p2508_p5 = scmp.lt.s32.totalorder %s2506_s6, %s2500_s30 }
  0x47   : > { %v2760_v14 = vmul.f32 %v2747_v6, %v2752_v11 }
  0x48   : > { %v235_v15 = vand.u32 2147483647, %v2754_v12  ;;  %v238_v16 = vand.u32 2139095040, %v2754_v12  ;;  %v338_v17 = vand.u32 2147483647, %v2756_v13  ;;  %v341_v18 = vand.u32 2139095040, %v2756_v13  ;;  %p2503_p3 = pneg %p2502_p0  ;;  %p2509_p12 = por %p2508_p5, %p2507_p13 }
  0x49   : > { %v675_v23 = vand.u32 2139095040, %v2760_v14 }
  0x4a   : > { %v239_v19 = vshrl.u32 %v238_v16, 23  ;;  %v242_v20 = vand.u32 8388607, %v235_v15  ;;  %v342_v21 = vshrl.u32 %v341_v18, 23  ;;  %v345_v22 = vand.u32 8388607, %v338_v17  ;;  %p2510_p6 = pnand %p2509_p12, %p2503_p3 }
  0x4b   : > { %v676_v26 = vshrl.u32 %v675_v23, 23 }
  0x4c   : > { %v2263_v24 = vadd.s32 4294967169, %v239_v19  ;;  %v2267_v25 = vadd.s32 4294967169, %v342_v21  ;;  %v243_v28 = vor.u32 8388608, %v242_v20  ;;  %v346_v29 = vor.u32 8388608, %v345_v22 }
  0x4d   : > { %v2282_v31 = vadd.s32 4294967169, %v676_v26 }
  0x4e   : > { %v245_v27 = vadd.s32 1, %v2263_v24  ;;  %v348_v30 = vadd.s32 1, %v2267_v25  ;;  %v2774_v37 = vshll.u32 %v243_v28, 8  ;;  %v2776_v39 = vshll.u32 %v346_v29, 8 }
  0x4f   : > { %v2778_v40 = vadd.s32 1, %v2282_v31 }
  0x50   : > { %vm246_vm0 = vcmp.gt.s32.totalorder %v245_v27, 0  ;;  %vm349_vm1 = vcmp.gt.s32.totalorder %v348_v30, 0 }
  0x51   : > { %v247_v32 = vsel %vm246_vm0, %v245_v27, 0  ;;  %v350_v35 = vsel %vm349_vm1, %v348_v30, 0  ;;  %vm683_vm6 = vcmp.gt.s32.totalorder %v2778_v40, 0 }
  0x52   : > { %v248_v33 = vshrl.u32 %v247_v32, 5  ;;  %v249_v34 = vand.u32 31, %v247_v32  ;;  %v352_v38 = vand.u32 31, %v350_v35  ;;  %v2785_v52 = vshrl.u32 %v350_v35, 5 }
  0x54   : > { %v250_v41 = vsub.s32 32, %v249_v34  ;;  %v252_v43 = vshll.u32 %v2588_v42, %v249_v34  ;;  %v255_v45 = vshll.u32 %v2589_v44, %v249_v34  ;;  %v258_v47 = vshll.u32 %v2590_v46, %v249_v34 }
  0x55   : > { %v261_v49 = vshll.u32 %v2591_v48, %v249_v34  ;;  %v264_v51 = vshll.u32 %v2592_v50, %v249_v34  ;;  %vm267_vm2 = vcmp.lt.s32.totalorder %v248_v33, 1  ;;  %vm268_vm3 = vcmp.lt.s32.totalorder %v248_v33, 2 }
  0x56   : > { %v251_v53 = vshrl.u32 %v2588_v42, %v250_v41  ;;  %v253_v54 = vshrl.u32 %v2589_v44, %v250_v41  ;;  %v256_v55 = vshrl.u32 %v2590_v46, %v250_v41  ;;  %v259_v56 = vshrl.u32 %v2591_v48, %v250_v41 }
  0x57   : > { %v262_v57 = vshrl.u32 %v2592_v50, %v250_v41  ;;  %v265_v59 = vshrl.u32 %v2593_v58, %v250_v41  ;;  %vm270_vm4 = vcmp.lt.s32.totalorder %v248_v33, 4  ;;  %v353_v63 = vsub.s32 32, %v352_v38 }
  0x58   : > { %v254_v60 = vor.u32 %v253_v54, %v252_v43  ;;  %v257_v61 = vor.u32 %v256_v55, %v255_v45  ;;  %v260_v62 = vor.u32 %v259_v56, %v258_v47  ;;  %vm269_vm5 = vcmp.lt.s32.totalorder %v248_v33, 3 }
  0x59   : > { %v263_v0 = vor.u32 %v262_v57, %v261_v49  ;;  %v266_v2 = vor.u32 %v265_v59, %v264_v51  ;;  %v355_v5 = vshll.u32 %v2588_v42, %v352_v38  ;;  %v358_v20 = vshll.u32 %v2589_v44, %v352_v38 }
  0x5a   : > { %v271_v7 = vsel %vm267_vm2, %v251_v53, %v254_v60  ;;  %v272_v8 = vsel %vm270_vm4, %v260_v62, 2102212464  ;;  %v275_v9 = vsel %vm267_vm2, %v254_v60, %v257_v61  ;;  %v279_v10 = vsel %vm267_vm2, %v257_v61, %v260_v62 }
  0x5b   : > { %v273_v16 = vsel %vm269_vm5, %v257_v61, %v272_v8  ;;  %v276_v18 = vsel %vm270_vm4, %v263_v0, 920167782  ;;  %v280_v19 = vsel %vm270_vm4, %v266_v2, 1326507024  ;;  %v354_v23 = vshrl.u32 %v2588_v42, %v353_v63 }
  0x5c   : > { %v277_v21 = vsel %vm269_vm5, %v260_v62, %v276_v18  ;;  %v281_v22 = vsel %vm269_vm5, %v263_v0, %v280_v19  ;;  %v356_v24 = vshrl.u32 %v2589_v44, %v353_v63  ;;  %v274_v25 = vsel %vm268_vm3, %v271_v7, %v273_v16 }
  0x5d   : > { %v278_v26 = vsel %vm268_vm3, %v275_v9, %v277_v21  ;;  %v282_v27 = vsel %vm268_vm3, %v279_v10, %v281_v22  ;;  %v359_v28 = vshrl.u32 %v2590_v46, %v353_v63  ;;  %v361_v41 = vshll.u32 %v2590_v46, %v352_v38 }
  0x5e   : > { %v2806_v29 = vmul.u32.u64.low %v2774_v37, %v282_v27  ;;  %v2807_v30 = vmul.u32.u64.high %v2774_v37, %v282_v27, %v2806_v29  ;;  %v2810_v31 = vmul.u32.u64.low %v2774_v37, %v278_v26  ;;  %v2811_v32 = vmul.u32.u64.high %v2774_v37, %v278_v26, %v2810_v31 }
  0x5f   : > { %v357_v34 = vor.u32 %v356_v24, %v355_v5  ;;  %v360_v35 = vor.u32 %v359_v28, %v358_v20  ;;  %v362_v43 = vshrl.u32 %v2591_v48, %v353_v63  ;;  %v364_v33 = vshll.u32 %v2591_v48, %v352_v38 }
  0x60   : > { %v365_v45 = vshrl.u32 %v2592_v50, %v353_v63  ;;  %v367_v47 = vshll.u32 %v2592_v50, %v352_v38  ;;  %v368_v49 = vshrl.u32 %v2593_v58, %v353_v63  ;;  %v290_v51 = vmul.u32 %v2774_v37, %v274_v25 }
  0x61   : > { %v363_v53 = vor.u32 %v362_v43, %v361_v41  ;;  %vm370_vm7 = vcmp.lt.s32.totalorder %v2785_v52, 1  ;;  %vm371_vm8 = vcmp.lt.s32.totalorder %v2785_v52, 2  ;;  %vm292_vm9 = vc.u32 %v2807_v30, %v2810_v31 }
  0x62   : > { %v293_v54 = vadd.s32 1, %v2811_v32  ;;  %v366_v55 = vor.u32 %v365_v45, %v364_v33  ;;  %vm372_vm10 = vcmp.lt.s32.totalorder %v2785_v52, 3  ;;  %v369_v56 = vor.u32 %v368_v49, %v367_v47 }
  0x63   : > { %vm373_vm11 = vcmp.lt.s32.totalorder %v2785_v52, 4  ;;  %v374_v38 = vsel %vm370_vm7, %v354_v23, %v357_v34  ;;  %v378_v57 = vsel %vm370_vm7, %v357_v34, %v360_v35  ;;  %v382_v61 = vsel %vm370_vm7, %v360_v35, %v363_v53 }
  0x64   : > { %v294_v37 = vsel %vm292_vm9, %v293_v54, %v2811_v32  ;;  %v375_v59 = vsel %vm373_vm11, %v363_v53, 2102212464  ;;  %v379_v60 = vsel %vm373_vm11, %v366_v55, 920167782  ;;  %v383_v2 = vsel %vm373_vm11, %v369_v56, 1326507024 }
  0x65   : > { %v295_v62 = vadd.s32 %v294_v37, %v290_v51  ;;  %v376_v63 = vsel %vm372_vm10, %v360_v35, %v375_v59  ;;  %v380_v0 = vsel %vm372_vm10, %v363_v53, %v379_v60  ;;  %v384_v8 = vsel %vm372_vm10, %v366_v55, %v383_v2 }
  0x66   : > { %v377_v5 = vsel %vm371_vm8, %v374_v38, %v376_v63  ;;  %v381_v7 = vsel %vm371_vm8, %v378_v57, %v380_v0  ;;  %v684_v9 = vsel %vm683_vm6, %v2778_v40, 0  ;;  %v385_v16 = vsel %vm371_vm8, %v382_v61, %v384_v8 }
  0x67   : > { %v296_v10 = vadd.s32 536870912, %v295_v62  ;;  %v2839_v18 = vmul.u32.u64.low %v2776_v39, %v381_v7  ;;  %v2840_v19 = vmul.u32.u64.high %v2776_v39, %v381_v7, %v2839_v18  ;;  %v2849_v22 = vmul.f32 %v2747_v6, %v2772_v36 }
  0x68   : > { %v2844_v20 = vmul.u32.u64.low %v2776_v39, %v385_v16  ;;  %v2845_v21 = vmul.u32.u64.high %v2776_v39, %v385_v16, %v2844_v20  ;;  %v672_v23 = vand.u32 2147483647, %v2760_v14  ;;  %v686_v24 = vand.u32 31, %v684_v9 }
  0x69   : > { %v2852_v40 = vshrl.u32 %v296_v10, 30  ;;  %v393_v52 = vmul.u32 %v2776_v39, %v377_v5  ;;  %v396_v26 = vadd.s32 1, %v2840_v19  ;;  %v778_v6 = vand.u32 2139095040, %v2849_v22 }
  0x6a   : > { %vm395_vm12 = vc.u32 %v2845_v21, %v2839_v18  ;;  %v679_v27 = vand.u32 8388607, %v672_v23  ;;  %v687_v32 = vsub.s32 32, %v686_v24  ;;  %v685_v45 = vshrl.u32 %v684_v9, 5 }
  0x6b   : > { %v298_v25 = vshll.u32 %v2852_v40, 30  ;;  %v397_v29 = vsel %vm395_vm12, %v396_v26, %v2840_v19  ;;  %v779_v43 = vshrl.u32 %v778_v6, 23  ;;  %v695_v47 = vshll.u32 %v2590_v46, %v686_v24 }
  0x6c   : > { %v398_v34 = vadd.s32 %v397_v29, %v393_v52  ;;  %v680_v39 = vor.u32 8388608, %v679_v27  ;;  %v696_v49 = vshrl.u32 %v2591_v48, %v687_v32  ;;  %v689_v53 = vshll.u32 %v2588_v42, %v686_v24 }
  0x6d   : > { %v299_v28 = vsub.s32 %v295_v62, %v298_v25  ;;  %v690_v54 = vshrl.u32 %v2589_v44, %v687_v32  ;;  %v692_v55 = vshll.u32 %v2589_v44, %v686_v24  ;;  %v693_v38 = vshrl.u32 %v2590_v46, %v687_v32 }
  0x6e   : > { %v399_v41 = vadd.s32 536870912, %v398_v34  ;;  %v698_v57 = vshll.u32 %v2591_v48, %v686_v24  ;;  %v699_v37 = vshrl.u32 %v2592_v50, %v687_v32  ;;  %v701_v60 = vshll.u32 %v2592_v50, %v686_v24 }
  0x6f   : > { %v301_v35 = vsub.s32 0, %v299_v28  ;;  %v702_v61 = vshrl.u32 %v2593_v58, %v687_v32  ;;  %v2876_v62 = vshll.u32 %v680_v39, 8  ;;  %v291_v63 = vadd.s32 %v2810_v31, %v2807_v30 }
  0x70   : > { %v2865_v51 = vshrl.u32 %v399_v41, 30  ;;  %v697_v2 = vor.u32 %v696_v49, %v695_v47  ;;  %v2286_v5 = vadd.s32 4294967169, %v779_v43  ;;  %v688_v8 = vshrl.u32 %v2588_v42, %v687_v32 }
  0x71   : > { %v2264_v33 = vmin.u32 %v301_v35, %v299_v28  ;;  %v691_v9 = vor.u32 %v690_v54, %v689_v53  ;;  %vm707_vm13 = vcmp.lt.s32.totalorder %v685_v45, 4  ;;  %v694_v10 = vor.u32 %v693_v38, %v692_v55 }
  0x72   : > { %v401_v59 = vshll.u32 %v2865_v51, 30  ;;  %v700_v16 = vor.u32 %v699_v37, %v698_v57  ;;  %v709_v19 = vsel %vm707_vm13, %v697_v2, 2102212464  ;;  %v703_v52 = vor.u32 %v702_v61, %v701_v60 }
  0x73   : > { %v303_v56 = vclz %v2264_v33  ;;  %vm704_vm15 = vcmp.lt.s32.totalorder %v685_v45, 1  ;;  %vm706_vm0 = vcmp.lt.s32.totalorder %v685_v45, 3  ;;  %vm705_vm1 = vcmp.lt.s32.totalorder %v685_v45, 2 }
  0x74   : > { %v2880_v7 = vsub.s32 %v398_v34, %v401_v59  ;;  %v708_v27 = vsel %vm704_vm15, %v688_v8, %v691_v9  ;;  %v710_v6 = vsel %vm706_vm0, %v694_v10, %v709_v19  ;;  %v712_v34 = vsel %vm704_vm15, %v691_v9, %v694_v10 }
  0x75   : > { %v2265_v0 = vadd.s32 4294967294, %v303_v56  ;;  %v713_v35 = vsel %vm707_vm13, %v700_v16, 920167782  ;;  %v716_v43 = vsel %vm704_vm15, %v694_v10, %v697_v2  ;;  %v717_v33 = vsel %vm707_vm13, %v703_v52, 1326507024 }
  0x76   : > { %v404_v24 = vsub.s32 0, %v2880_v7  ;;  %v714_v39 = vsel %vm706_vm0, %v697_v2, %v713_v35  ;;  %v651_v53 = vadd.s32 8, %v2738_v1  ;;  %v718_v55 = vsel %vm706_vm0, %v700_v16, %v717_v33 }
  0x77   : > { %vm2266_vm14 = vcmp.lt.s32.totalorder %v2265_v0, 0  ;;  %v715_v54 = vsel %vm705_vm1, %v712_v34, %v714_v39  ;;  %v711_v57 = vsel %vm705_vm1, %v708_v27, %v710_v6  ;;  %v719_v37 = vsel %vm705_vm1, %v716_v43, %v718_v55 }
  0x78   : > { %v306_v20 = vsel %vm2266_vm14, 0, %v2265_v0  ;;  %v2268_v26 = vmin.u32 %v404_v24, %v2880_v7  ;;  %v2896_v59 = vmul.u32.u64.low %v2876_v62, %v719_v37  ;;  %v2897_v60 = vmul.u32.u64.high %v2876_v62, %v719_v37, %v2896_v59 }
  0x79   : > { %v307_v30 = vsub.s32 32, %v306_v20  ;;  %v308_v31 = vshll.u32 %v299_v28, %v306_v20  ;;  %v311_v25 = vsub.s32 4294967266, %v306_v20  ;;  %v785_v61 = vadd.s32 1, %v2286_v5 }
  0x7a   : > { %v406_v41 = vclz %v2268_v26  ;;  %v2900_v2 = vmul.u32.u64.low %v2876_v62, %v715_v54  ;;  %v2901_v8 = vmul.u32.u64.high %v2876_v62, %v715_v54, %v2900_v2  ;;  %v652_v16 = vcvt.s32.f32 %v651_v53 }
  0x7b   : > { %v309_v29 = vshrl.u32 %v291_v63, %v307_v30  ;;  %v312_v32 = vadd.s32 127, %v311_v25  ;;  %vm786_vm3 = vcmp.gt.s32.totalorder %v785_v61, 0  ;;  %v321_v45 = vsub.s32 4, %v2852_v40 }
  0x7c   : > { %v2269_v49 = vadd.s32 4294967294, %v406_v41  ;;  %v787_v19 = vsel %vm786_vm3, %v785_v61, 0  ;;  %v727_v20 = vmul.u32 %v2876_v62, %v711_v57  ;;  %vm729_vm4 = vc.u32 %v2897_v60, %v2900_v2 }
  0x7d   : > { %v310_v28 = vor.u32 %v309_v29, %v308_v31  ;;  %v313_v47 = vshll.u32 %v312_v32, 23  ;;  %v775_v5 = vand.u32 2147483647, %v2849_v22  ;;  %v394_v24 = vadd.s32 %v2839_v18, %v2845_v21 }
  0x7e   : > { %vm2270_vm2 = vcmp.lt.s32.totalorder %v2269_v49, 0  ;;  %v730_v30 = vadd.s32 1, %v2901_v8  ;;  %v789_v31 = vand.u32 31, %v787_v19  ;;  %vm237_vm5 = vcmp.lt.s32.totalorder %v2754_v12, 0 }
  0x7f   : > { %v314_v56 = vor.u32 4788187, %v313_v47  ;;  %v317_v38 = vcvt.s32.f32 %v310_v28  ;;  %v409_v0 = vsel %vm2270_vm2, 0, %v2269_v49  ;;  %vm2916_vm6 = vcmp.le.f32.partialorder %v235_v15, 0.7853982 }
  0x80   : > { %v414_v9 = vsub.s32 4294967266, %v409_v0  ;;  %v410_v52 = vsub.s32 32, %v409_v0  ;;  %v731_v27 = vsel %vm729_vm4, %v730_v30, %v2901_v8  ;;  %v790_v6 = vsub.s32 32, %v789_v31 }
  0x81   : > { %v315_v63 = vand.u32 2147483647, %v314_v56  ;;  %v2920_v29 = vadd.f32 -8.0, %v652_v16  ;;  %v732_v18 = vadd.s32 %v731_v27, %v727_v20  ;;  %v782_v21 = vand.u32 8388607, %v775_v5 }
  0x82   : > { %v415_v26 = vadd.s32 127, %v414_v9  ;;  %v322_v32 = vsel %vm237_vm5, %v321_v45, %v2852_v40  ;;  %v411_v34 = vshll.u32 %v2880_v7, %v409_v0  ;;  %v412_v35 = vshrl.u32 %v394_v24, %v410_v52 }
  0x83   : > { %v318_v10 = vmul.f32 %v317_v38, %v315_v63  ;;  %v788_v41 = vshrl.u32 %v787_v19, 5  ;;  %v733_v33 = vadd.s32 536870912, %v732_v18  ;;  %v792_v15 = vshll.u32 %v2588_v42, %v789_v31 }
  0x84   : > { %v416_v43 = vshll.u32 %v415_v26, 23  ;;  %v793_v28 = vshrl.u32 %v2589_v44, %v790_v6  ;;  %v795_v47 = vshll.u32 %v2589_v44, %v789_v31  ;;  %v796_v49 = vshrl.u32 %v2590_v46, %v790_v6 }
  0x85   : > { %v319_v25 = vxor.u32 2147483648, %v318_v10  ;;  %v801_v53 = vshll.u32 %v2591_v48, %v789_v31  ;;  %v2931_v54 = vshrl.u32 %v733_v33, 30  ;;  %v798_v40 = vshll.u32 %v2590_v46, %v789_v31 }
  0x86   : > { %v799_v7 = vshrl.u32 %v2591_v48, %v790_v6  ;;  %v802_v55 = vshrl.u32 %v2592_v50, %v790_v6  ;;  %v413_v56 = vor.u32 %v412_v35, %v411_v34  ;;  %v783_v38 = vor.u32 8388608, %v782_v21 }
  0x87   : > { %v320_v39 = vsel %vm237_vm5, %v319_v25, %v318_v10  ;;  %v804_v57 = vshll.u32 %v2592_v50, %v789_v31  ;;  %v805_v37 = vshrl.u32 %v2593_v58, %v790_v6  ;;  %v324_v61 = vsel %vm2916_vm6, 0, %v322_v32 }
  0x88   : > { %v323_v59 = vsel %vm2916_vm6, %v2754_v12, %v320_v39  ;;  %v2945_v63 = vmul.f32 %v2920_v29, %v2752_v11  ;;  %v735_v0 = vshll.u32 %v2931_v54, 30  ;;  %v417_v8 = vor.u32 4788187, %v416_v43 }
  0x89   : > { %v794_v9 = vor.u32 %v793_v28, %v792_v15  ;;  %v797_v10 = vor.u32 %v796_v49, %v795_v47  ;;  %v803_v16 = vor.u32 %v802_v55, %v801_v53  ;;  %v800_v45 = vor.u32 %v799_v7, %v798_v40 }
  0x8a   : > { %v2948_v19 = vsub.s32 %v732_v18, %v735_v0  ;;  %vm807_vm7 = vcmp.lt.s32.totalorder %v788_v41, 1  ;;  %vm810_vm8 = vcmp.lt.s32.totalorder %v788_v41, 4  ;;  %v420_v20 = vcvt.s32.f32 %v413_v56 }
  0x8b   : > { %v791_v24 = vshrl.u32 %v2588_v42, %v790_v6  ;;  %v806_v52 = vor.u32 %v805_v37, %v804_v57  ;;  %v823_v30 = vshll.u32 %v783_v38, 8  ;;  %2420 = vcosq.f32 %v323_v59 }
  0x8c   : > { %v738_v11 = vsub.s32 0, %v2948_v19  ;;  %vm809_vm9 = vcmp.lt.s32.totalorder %v788_v41, 3  ;;  %v812_v31 = vsel %vm810_vm8, %v800_v45, 2102212464  ;;  %v418_v25 = vand.u32 2147483647, %v417_v8 }
  0x8d   : > { %vm808_vm10 = vcmp.lt.s32.totalorder %v788_v41, 2  ;;  %v815_v26 = vsel %vm807_vm7, %v794_v9, %v797_v10  ;;  %v816_v27 = vsel %vm810_vm8, %v803_v16, 920167782  ;;  %2422 = vsinq.f32 %v323_v59 }
  0x8e   : > { %v424_v62 = vsub.s32 4, %v2865_v51  ;;  %v2283_v18 = vmin.u32 %v738_v11, %v2948_v19  ;;  %v819_v6 = vsel %vm807_vm7, %v797_v10, %v800_v45  ;;  %v811_v21 = vsel %vm807_vm7, %v791_v24, %v794_v9 }
  0x8f   : > { %v813_v32 = vsel %vm809_vm9, %v797_v10, %v812_v31  ;;  %v817_v34 = vsel %vm809_vm9, %v800_v45, %v816_v27  ;;  %v820_v35 = vsel %vm810_vm8, %v806_v52, 1326507024  ;;  %v881_v15 = vand.u32 2139095040, %v2945_v63 }
  0x90   : > { %v740_v39 = vclz %v2283_v18  ;;  %v818_v43 = vsel %vm808_vm10, %v815_v26, %v817_v34  ;;  %v821_v33 = vsel %vm809_vm9, %v803_v16, %v820_v35  ;;  %v421_v28 = vmul.f32 %v420_v20, %v418_v25 }
  0x91   : > { %v822_v47 = vsel %vm808_vm10, %v819_v6, %v821_v33  ;;  %v2966_v49 = vmul.u32.u64.low %v823_v30, %v818_v43  ;;  %v2967_v53 = vmul.u32.u64.high %v823_v30, %v818_v43, %v2966_v49  ;;  %v814_v7 = vsel %vm808_vm10, %v811_v21, %v813_v32 }
  0x92   : > { %v2284_v40 = vadd.s32 4294967294, %v740_v39  ;;  %v2971_v55 = vmul.u32.u64.low %v823_v30, %v822_v47  ;;  %v2972_v56 = vmul.u32.u64.high %v823_v30, %v822_v47, %v2971_v55  ;;  %vm340_vm11 = vcmp.lt.s32.totalorder %v2756_v13, 0 }
  0x93   : > { %v534_v38 = vadd.s32 3, %v324_v61  ;;  %v2977_v57 = vmul.f32 %v2920_v29, %v2772_v36  ;;  %v2979_v37 = vand.u32 3, %v324_v61  ;;  %v728_v59 = vadd.s32 %v2900_v2, %v2897_v60 }
  0x94   : > { %vm2285_vm12 = vcmp.lt.s32.totalorder %v2284_v40, 0  ;;  %v882_v0 = vshrl.u32 %v881_v15, 23  ;;  %vm674_vm13 = vcmp.lt.s32.totalorder %v2760_v14, 0  ;;  %v830_v8 = vmul.u32 %v823_v30, %v814_v7 }
  0x95   : > { %v743_v41 = vsel %vm2285_vm12, 0, %v2284_v40  ;;  %v833_v9 = vadd.s32 1, %v2967_v53  ;;  %vm2987_vm14 = vcmp.le.f32.partialorder %v338_v17, 0.7853982  ;;  %v422_v36 = vxor.u32 2147483648, %v421_v28 }
  0x96   : > { %v425_v29 = vsel %vm340_vm11, %v424_v62, %v2865_v51  ;;  %v744_v60 = vsub.s32 32, %v743_v41  ;;  %v2994_v2 = vand.u32 3, %v534_v38  ;;  %v745_v61 = vshll.u32 %v2948_v19, %v743_v41 }
  0x97   : > { %v748_v16 = vsub.s32 4294967266, %v743_v41  ;;  %vm832_vm15 = vc.u32 %v2972_v56, %v2966_v49  ;;  %vm329_vm0 = vcmp.lt.s32.totalorder %v2979_v37, 2  ;;  %vm330_vm1 = vcmp.eq.s32.totalorder %v2979_v37, 0 }
  0x98   : > { %vm3003_vm2 = vcmp.le.f32.partialorder %v672_v23, 0.7853982  ;;  %v746_v51 = vshrl.u32 %v728_v59, %v744_v60  ;;  %v834_v45 = vsel %vm832_vm15, %v833_v9, %v2967_v53  ;;  %v2290_v20 = vadd.s32 4294967169, %v882_v0  ;;  %v2421_v24 = vpop.eup %2420 }
  0x99   : > { %v427_v19 = vsel %vm2987_vm14, 0, %v425_v29  ;;  %v749_v52 = vadd.s32 127, %v748_v16  ;;  %v758_v30 = vsub.s32 4, %v2931_v54  ;;  %v835_v11 = vadd.s32 %v834_v45, %v830_v8 }
  0x9a   : > { %vm333_vm3 = vcmp.eq.s32.totalorder %v2979_v37, 2  ;;  %v423_v23 = vsel %vm340_vm11, %v422_v36, %v421_v28  ;;  %v878_v31 = vand.u32 2147483647, %v2945_v63  ;;  %v888_v25 = vadd.s32 1, %v2290_v20  ;;  %v2423_v26 = vpop.eup %2422 }
  0x9b   : > { %vm536_vm4 = vcmp.lt.s32.totalorder %v2994_v2, 2  ;;  %v747_v27 = vor.u32 %v746_v51, %v745_v61  ;;  %v750_v62 = vshll.u32 %v749_v52, 23  ;;  %v836_v18 = vadd.s32 536870912, %v835_v11 }
  0x9c   : > { %vm537_vm5 = vcmp.eq.s32.totalorder %v2994_v2, 0  ;;  %vm540_vm6 = vcmp.eq.s32.totalorder %v2994_v2, 2  ;;  %v638_v6 = vadd.s32 3, %v427_v19  ;;  %vm889_vm7 = vcmp.gt.s32.totalorder %v888_v25, 0 }
  0x9d   : > { %v426_v21 = vsel %vm2987_vm14, %v2756_v13, %v423_v23  ;;  %v751_v32 = vor.u32 4788187, %v750_v62  ;;  %v759_v34 = vsel %vm674_vm13, %v758_v30, %v2931_v54  ;;  %v3024_v35 = vshrl.u32 %v836_v18, 30 }
  0x9e   : > { %v331_v39 = vxor.u32 2147483648, %v2423_v26  ;;  %v334_v43 = vxor.u32 2147483648, %v2421_v24  ;;  %v885_v33 = vand.u32 8388607, %v878_v31  ;;  %v890_v15 = vsel %vm889_vm7, %v888_v25, 0 }
  0x9f   : > { %v3028_v28 = vand.u32 3, %v427_v19  ;;  %v752_v47 = vand.u32 2147483647, %v751_v32  ;;  %v754_v53 = vcvt.s32.f32 %v747_v27  ;;  %v838_v40 = vshll.u32 %v3024_v35, 30 }
  0xa0   : > { %v332_v7 = vsel %vm330_vm1, %v2421_v24, %v331_v39  ;;  %v335_v54 = vsel %vm333_vm3, %v334_v43, %v2423_v26  ;;  %2424 = vcosq.f32 %v426_v21  ;;  %v892_v55 = vand.u32 31, %v890_v15 }
  0xa1   : > { %2426 = vsinq.f32 %v426_v21  ;;  %v3035_v38 = vand.u32 3, %v638_v6  ;;  %v3039_v59 = vsel %vm3003_vm2, 0, %v759_v34  ;;  %v3041_v0 = vsub.s32 %v835_v11, %v838_v40 }
  0xa2   : > { %v539_v41 = vsel %vm537_vm5, %v2421_v24, %v331_v39  ;;  %v542_v8 = vsel %vm540_vm6, %v334_v43, %v2423_v26  ;;  %v886_v9 = vor.u32 8388608, %v885_v33  ;;  %v893_v10 = vsub.s32 32, %v892_v55 }
  0xa3   : > { %v3049_v36 = vsel %vm329_vm0, %v332_v7, %v335_v54  ;;  %v755_v29 = vmul.f32 %v754_v53, %v752_v47  ;;  %v841_v60 = vsub.s32 0, %v3041_v0  ;;  %v984_v61 = vand.u32 2139095040, %v2977_v57 }
  0xa4   : > { %v895_v16 = vshll.u32 %v2588_v42, %v892_v55  ;;  %v896_v51 = vshrl.u32 %v2589_v44, %v893_v10  ;;  %v898_v45 = vshll.u32 %v2589_v44, %v892_v55  ;;  %v899_v20 = vshrl.u32 %v2590_v46, %v893_v10 }
  0xa5   : > { %v2287_v24 = vmin.u32 %v841_v60, %v3041_v0  ;;  %v891_v19 = vshrl.u32 %v890_v15, 5  ;;  %v901_v37 = vshll.u32 %v2590_v46, %v892_v55  ;;  %v902_v52 = vshrl.u32 %v2591_v48, %v893_v10 }
  0xa6   : > { %v543_v30 = vsel %vm536_vm4, %v539_v41, %v542_v8  ;;  %v831_v11 = vadd.s32 %v2966_v49, %v2972_v56  ;;  %v904_v23 = vshll.u32 %v2591_v48, %v892_v55  ;;  %v3065_v25 = vshll.u32 %v886_v9, 8 }
  0xa7   : > { %vm327_vm8 = vweird.f32 %v2754_v12  ;;  %v756_v26 = vxor.u32 2147483648, %v755_v29  ;;  %v843_v27 = vclz %v2287_v24  ;;  %v894_v62 = vshrl.u32 %v2588_v42, %v893_v10 }
  0xa8   : > { %v985_v18 = vshrl.u32 %v984_v61, 23  ;;  %v897_v6 = vor.u32 %v896_v51, %v895_v16  ;;  %v900_v21 = vor.u32 %v899_v20, %v898_v45  ;;  %v905_v32 = vshrl.u32 %v2592_v50, %v893_v10 }
  0xa9   : > { %v907_v2 = vshll.u32 %v2592_v50, %v892_v55  ;;  %vm436_vm9 = vcmp.eq.s32.totalorder %v3028_v28, 2  ;;  %v2288_v49 = vadd.s32 4294967294, %v843_v27  ;;  %v903_v56 = vor.u32 %v902_v52, %v901_v37 }
  0xaa   : > { %v908_v34 = vshrl.u32 %v2593_v58, %v893_v10  ;;  %vm910_vm10 = vcmp.lt.s32.totalorder %v891_v19, 1  ;;  %vm433_vm11 = vcmp.eq.s32.totalorder %v3028_v28, 0  ;;  %v906_v39 = vor.u32 %v905_v32, %v904_v23 }
  0xab   : > { %vm911_vm12 = vcmp.lt.s32.totalorder %v891_v19, 2  ;;  %vm912_vm14 = vcmp.lt.s32.totalorder %v891_v19, 3  ;;  %vm913_vm15 = vcmp.lt.s32.totalorder %v891_v19, 4  ;;  %vm2289_vm0 = vcmp.lt.s32.totalorder %v2288_v49, 0 }
  0xac   : > { %v909_v43 = vor.u32 %v908_v34, %v907_v2  ;;  %v914_v33 = vsel %vm910_vm10, %v894_v62, %v897_v6  ;;  %v915_v15 = vsel %vm913_vm15, %v903_v56, 2102212464  ;;  %vm641_vm1 = vcmp.eq.s32.totalorder %v3035_v38, 0 }
  0xad   : > { %vm644_vm3 = vcmp.eq.s32.totalorder %v3035_v38, 2  ;;  %v846_v47 = vsel %vm2289_vm0, 0, %v2288_v49  ;;  %v916_v53 = vsel %vm912_vm14, %v900_v21, %v915_v15  ;;  %v918_v40 = vsel %vm910_vm10, %v897_v6, %v900_v21  ;;  %v2425_v54 = vpop.eup %2424 }
  0xae   : > { %v919_v7 = vsel %vm913_vm15, %v906_v39, 920167782  ;;  %v847_v55 = vsub.s32 32, %v846_v47  ;;  %v848_v41 = vshll.u32 %v3041_v0, %v846_v47  ;;  %v851_v8 = vsub.s32 4294967266, %v846_v47  ;;  %v2427_v10 = vpop.eup %2426 }
  0xaf   : > { %v922_v9 = vsel %vm910_vm10, %v900_v21, %v903_v56  ;;  %vm432_vm4 = vcmp.lt.s32.totalorder %v3028_v28, 2  ;;  %v757_v60 = vsel %vm674_vm13, %v756_v26, %v755_v29  ;;  %v920_v61 = vsel %vm912_vm14, %v903_v56, %v919_v7 }
  0xb0   : > { %v923_v16 = vsel %vm913_vm15, %v909_v43, 1326507024  ;;  %v2294_v51 = vadd.s32 4294967169, %v985_v18  ;;  %vm640_vm5 = vcmp.lt.s32.totalorder %v3035_v38, 2  ;;  %v849_v45 = vshrl.u32 %v831_v11, %v847_v55 }
  0xb1   : > { %v852_v20 = vadd.s32 127, %v851_v8  ;;  %v921_v0 = vsel %vm911_vm12, %v918_v40, %v920_v61  ;;  %v924_v24 = vsel %vm912_vm14, %v906_v39, %v923_v16  ;;  %vm777_vm6 = vcmp.lt.s32.totalorder %v2849_v22, 0 }
  0xb2   : > { %v917_v37 = vsel %vm911_vm12, %v914_v33, %v916_v53  ;;  %v925_v52 = vsel %vm911_vm12, %v922_v9, %v924_v24  ;;  %v3095_v29 = vmul.u32.u64.low %v3065_v25, %v921_v0  ;;  %v3096_v23 = vmul.u32.u64.high %v3065_v25, %v921_v0, %v3095_v29 }
  0xb3   : > { %v850_v26 = vor.u32 %v849_v45, %v848_v41  ;;  %v853_v27 = vshll.u32 %v852_v20, 23  ;;  %v3100_v11 = vmul.u32.u64.low %v3065_v25, %v925_v52  ;;  %v3101_v62 = vmul.u32.u64.high %v3065_v25, %v925_v52, %v3100_v11 }
  0xb4   : > { %vm430_vm13 = vweird.f32 %v2756_v13  ;;  %v437_v18 = vxor.u32 2147483648, %v2425_v54  ;;  %v3106_v6 = vsel %vm327_vm8, nan, %v543_v30  ;;  %v760_v19 = vsel %vm3003_vm2, %v2760_v14, %v757_v60 }
  0xb5   : > { %v991_v21 = vadd.s32 1, %v2294_v51  ;;  %v434_v32 = vxor.u32 2147483648, %v2427_v10  ;;  %vm3113_vm7 = vcmp.le.f32.partialorder %v775_v5, 0.7853982  ;;  %v854_v49 = vor.u32 4788187, %v853_v27 }
  0xb6   : > { %v857_v56 = vcvt.s32.f32 %v850_v26  ;;  %v933_v34 = vmul.u32 %v3065_v25, %v917_v37  ;;  %v438_v30 = vsel %vm436_vm9, %v437_v18, %v2427_v10  ;;  %v936_v39 = vadd.s32 1, %v3096_v23 }
  0xb7   : > { %v981_v17 = vand.u32 2147483647, %v2977_v57  ;;  %vm992_vm2 = vcmp.gt.s32.totalorder %v991_v21, 0  ;;  %v435_v43 = vsel %vm433_vm11, %v2425_v54, %v434_v32  ;;  %2428 = vcosq.f32 %v760_v19 }
  0xb8   : > { %v855_v5 = vand.u32 2147483647, %v854_v49  ;;  %vm935_vm10 = vc.u32 %v3101_v62, %v3095_v29  ;;  %2430 = vsinq.f32 %v760_v19  ;;  %v861_v33 = vsub.s32 4, %v3024_v35 }
  0xb9   : > { %v937_v25 = vsel %vm935_vm10, %v936_v39, %v3096_v23  ;;  %v993_v15 = vsel %vm992_vm2, %v991_v21, 0  ;;  %v643_v47 = vsel %vm641_vm1, %v2425_v54, %v434_v32  ;;  %v646_v53 = vsel %vm644_vm3, %v437_v18, %v2427_v10 }
  0xba   : > { %v858_v40 = vmul.f32 %v857_v56, %v855_v5  ;;  %v938_v7 = vadd.s32 %v937_v25, %v933_v34  ;;  %v3135_v55 = vsel %vm327_vm8, nan, %v3049_v36  ;;  %v649_v41 = vsub.f32 0.0, %v3106_v6 }
  0xbb   : > { %v3139_v8 = vand.u32 3, %v3039_v59  ;;  %v995_v9 = vand.u32 31, %v993_v15  ;;  %v3143_v60 = vsel %vm432_vm4, %v435_v43, %v438_v30  ;;  %v988_v10 = vand.u32 8388607, %v981_v17 }
  0xbc   : > { %v859_v54 = vxor.u32 2147483648, %v858_v40  ;;  %v939_v61 = vadd.s32 536870912, %v938_v7  ;;  %v647_v12 = vsel %vm640_vm5, %v643_v47, %v646_v53  ;;  %v862_v36 = vsel %vm777_vm6, %v861_v33, %v3024_v35 }
  0xbd   : > { %v3152_v16 = vshrl.u32 %v993_v15, 5  ;;  %v996_v51 = vsub.s32 32, %v995_v9  ;;  %v998_v20 = vshll.u32 %v2588_v42, %v995_v9  ;;  %v1001_v0 = vshll.u32 %v2589_v44, %v995_v9 }
  0xbe   : > { %v860_v28 = vsel %vm777_vm6, %v859_v54, %v858_v40  ;;  %v3156_v45 = vshrl.u32 %v939_v61, 30  ;;  %v1004_v37 = vshll.u32 %v2590_v46, %v995_v9  ;;  %v1007_v35 = vshll.u32 %v2591_v48, %v995_v9 }
  0xbf   : > { %v999_v24 = vshrl.u32 %v2589_v44, %v996_v51  ;;  %v1002_v38 = vshrl.u32 %v2590_v46, %v996_v51  ;;  %v3166_v52 = vsel %vm430_vm13, nan, %v647_v12  ;;  %v989_v26 = vor.u32 8388608, %v988_v10 }
  0xc0   : > { %v941_v23 = vshll.u32 %v3156_v45, 30  ;;  %v1005_v27 = vshrl.u32 %v2591_v48, %v996_v51  ;;  %v863_v11 = vsel %vm3113_vm7, %v2849_v22, %v860_v28  ;;  %v3175_v44 = vsel %vm3113_vm7, 0, %v862_v36 }
  0xc1   : > { %v1008_v46 = vshrl.u32 %v2592_v50, %v996_v51  ;;  %vm1013_vm8 = vcmp.lt.s32.totalorder %v3152_v16, 1  ;;  %vm767_vm9 = vcmp.eq.s32.totalorder %v3139_v8, 0  ;;  %vm770_vm11 = vcmp.eq.s32.totalorder %v3139_v8, 2 }
  0xc2   : > { %v3181_v18 = vsub.s32 %v938_v7, %v941_v23  ;;  %v1000_v19 = vor.u32 %v999_v24, %v998_v20  ;;  %v1003_v48 = vor.u32 %v1002_v38, %v1001_v0  ;;  %v1010_v21 = vshll.u32 %v2592_v50, %v995_v9 }
  0xc3   : > { %v997_v32 = vshrl.u32 %v2588_v42, %v996_v51  ;;  %v1006_v49 = vor.u32 %v1005_v27, %v1004_v37  ;;  %v1009_v2 = vor.u32 %v1008_v46, %v1007_v35  ;;  %v1011_v56 = vshrl.u32 %v2593_v58, %v996_v51 }
  0xc4   : > { %v944_v34 = vsub.s32 0, %v3181_v18  ;;  %vm1016_vm12 = vcmp.lt.s32.totalorder %v3152_v16, 4  ;;  %v3188_v30 = vshll.u32 %v989_v26, 8  ;;  %v1177_v39 = vadd.s32 3, %v3039_v59  ;;  %v3191_v43 = vpop.eup %2428 }
  0xc5   : > { %2432 = vcosq.f32 %v863_v11  ;;  %v1012_v5 = vor.u32 %v1011_v56, %v1010_v21  ;;  %vm1015_vm14 = vcmp.lt.s32.totalorder %v3152_v16, 3  ;;  %v1018_v42 = vsel %vm1016_vm12, %v1006_v49, 2102212464  ;;  %v3196_v50 = vpop.eup %2430 }
  0xc6   : > { %vm766_vm15 = vcmp.lt.s32.totalorder %v3139_v8, 2  ;;  %2434 = vsinq.f32 %v863_v11  ;;  %v2291_v58 = vmin.u32 %v944_v34, %v3181_v18  ;;  %vm1014_vm0 = vcmp.lt.s32.totalorder %v3152_v16, 2 }
  0xc7   : > { %v1021_v59 = vsel %vm1013_vm8, %v1000_v19, %v1003_v48  ;;  %v1017_v33 = vsel %vm1013_vm8, %v997_v32, %v1000_v19  ;;  %v1022_v25 = vsel %vm1016_vm12, %v1009_v2, 920167782  ;;  %v1025_v15 = vsel %vm1013_vm8, %v1003_v48, %v1006_v49 }
  0xc8   : > { %v1026_v47 = vsel %vm1016_vm12, %v1012_v5, 1326507024  ;;  %vm880_vm1 = vcmp.lt.s32.totalorder %v2945_v63, 0  ;;  %v946_v53 = vclz %v2291_v58  ;;  %v1019_v40 = vsel %vm1015_vm14, %v1003_v48, %v1018_v42 }
  0xc9   : > { %v1023_v7 = vsel %vm1015_vm14, %v1006_v49, %v1022_v25  ;;  %v1027_v9 = vsel %vm1015_vm14, %v1009_v2, %v1026_v47  ;;  %v768_v54 = vxor.u32 2147483648, %v3196_v50  ;;  %v771_v61 = vxor.u32 2147483648, %v3191_v43 }
  0xca   : > { %v1024_v10 = vsel %vm1014_vm0, %v1021_v59, %v1023_v7  ;;  %v1028_v12 = vsel %vm1014_vm0, %v1025_v15, %v1027_v9  ;;  %vm764_vm3 = vweird.f32 %v2760_v14  ;;  %v3226_v36 = vand.u32 3, %v3175_v44 }
  0xcb   : > { %v2292_v51 = vadd.s32 4294967294, %v946_v53  ;;  %v3229_v28 = vmul.u32.u64.low %v3188_v30, %v1028_v12  ;;  %v3230_v20 = vmul.u32.u64.high %v3188_v30, %v1028_v12, %v3229_v28  ;;  %v3235_v0 = vsel %vm430_vm13, nan, %v3143_v60 }
  0xcc   : > { %vm3239_vm4 = vcmp.le.f32.partialorder %v878_v31, 0.7853982  ;;  %v1020_v38 = vsel %vm1014_vm0, %v1017_v33, %v1019_v40  ;;  %v3246_v37 = vmul.u32.u64.low %v3188_v30, %v1024_v10  ;;  %v3247_v35 = vmul.u32.u64.high %v3188_v30, %v1024_v10, %v3246_v37 }
  0xcd   : > { %v650_v23 = vsub.f32 0.0, %v3166_v52  ;;  %v934_v13 = vadd.s32 %v3095_v29, %v3101_v62  ;;  %vm2293_vm5 = vcmp.lt.s32.totalorder %v2292_v51, 0  ;;  %v1178_v60 = vand.u32 3, %v1177_v39 }
  0xce   : > { %v769_v31 = vsel %vm767_vm9, %v3191_v43, %v768_v54  ;;  %v772_v16 = vsel %vm770_vm11, %v771_v61, %v3196_v50  ;;  %v949_v26 = vsel %vm2293_vm5, 0, %v2292_v51  ;;  %v964_v27 = vsub.s32 4, %v3156_v45 }
  0xcf   : > { %vm873_vm6 = vcmp.eq.s32.totalorder %v3226_v36, 2  ;;  %v950_v11 = vsub.s32 32, %v949_v26  ;;  %v951_v46 = vshll.u32 %v3181_v18, %v949_v26  ;;  %v954_v19 = vsub.s32 4294967266, %v949_v26 }
  0xd0   : > { %v1036_v29 = vmul.u32 %v3188_v30, %v1020_v38  ;;  %vm1038_vm13 = vc.u32 %v3230_v20, %v3246_v37  ;;  %v1039_v62 = vadd.s32 1, %v3247_v35  ;;  %v1281_v48 = vadd.s32 3, %v3175_v44 }
  0xd1   : > { %v1502_v21 = vcombine.low %v3135_v55, %v3235_v0  ;;  %vm870_vm7 = vcmp.eq.s32.totalorder %v3226_v36, 0  ;;  %v952_v32 = vshrl.u32 %v934_v13, %v950_v11  ;;  %v955_v49 = vadd.s32 127, %v954_v19 }
  0xd2   : > { %vm1180_vm2 = vcmp.eq.s32.totalorder %v1178_v60, 0  ;;  %vm1183_vm10 = vcmp.eq.s32.totalorder %v1178_v60, 2  ;;  %v773_v18 = vsel %vm766_vm15, %v769_v31, %v772_v16  ;;  %v965_v2 = vsel %vm880_vm1, %v964_v27, %v3156_v45  ;;  %v2433_v34 = vpop.eup %2432 }
  0xd3   : > { %vm983_vm8 = vcmp.lt.s32.totalorder %v2977_v57, 0  ;;  %v1040_v44 = vsel %vm1038_vm13, %v1039_v62, %v3247_v35  ;;  %v1503_v56 = vcombine.high %v3135_v55, %v3235_v0  ;;  %v953_v30 = vor.u32 %v952_v32, %v951_v46  ;;  %v2435_v42 = vpop.eup %2434 }
  0xd4   : > { %v956_v39 = vshll.u32 %v955_v49, 23  ;;  %v1041_v5 = vadd.s32 %v1040_v44, %v1036_v29  ;;  %vm869_vm9 = vcmp.lt.s32.totalorder %v3226_v36, 2  ;;  %vm3282_vm11 = vcmp.le.f32.partialorder %v981_v17, 0.7853982 }
  0xd5   : > { %vm1179_vm12 = vcmp.lt.s32.totalorder %v1178_v60, 2  ;;  %v1182_v45 = vsel %vm1180_vm2, %v3191_v43, %v768_v54  ;;  %v1185_v58 = vsel %vm1183_vm10, %v771_v61, %v3196_v50  ;;  %v1282_v59 = vand.u32 3, %v1281_v48 }
  0xd6   : > { %v957_v33 = vor.u32 4788187, %v956_v39  ;;  %v960_v25 = vcvt.s32.f32 %v953_v30  ;;  %v967_v15 = vsel %vm3239_vm4, 0, %v965_v2  ;;  %v1042_v47 = vadd.s32 536870912, %v1041_v5 }
  0xd7   : > { %v3292_v53 = vsel %vm764_vm3, nan, %v773_v18  ;;  %v874_v17 = vxor.u32 2147483648, %v2433_v34  ;;  %v3294_v40 = vand.u32 3, %v967_v15  ;;  %v2594_v7 = vmov 1966171168  }
  0xd8   : > { %v1505_v9 = vunpack.c.l.s4 %v2594_v7  ;;  %vm867_vm14 = vweird.f32 %v2849_v22  ;;  %v958_v43 = vand.u32 2147483647, %v957_v33  ;;  %v1043_v50 = vshrl.u32 %v1042_v47, 30 }
  0xd9   : > { %v1186_v54 = vsel %vm1179_vm12, %v1182_v45, %v1185_v58  ;;  %v871_v61 = vxor.u32 2147483648, %v2435_v42  ;;  %vm1287_vm15 = vcmp.eq.s32.totalorder %v1282_v59, 2  ;;  %v1555_v12 = vcombine.high %v649_v41, %v650_v23 }
  0xda   : > { %v1506_v10 = vunpack.c.0.s8 %v1505_v9  ;;  %v2595_v51 = vmov 0.0   ;;  %v961_v28 = vmul.f32 %v960_v25, %v958_v43  ;;  %v1044_v38 = vshll.u32 %v1043_v50, 30 }
  0xdb   : > { %2021 = vmatprep.mubr.f32.mxu0 %v2595_v51  ;;  %2092 = vmatprep.mubr.f32.mxu1 %v2595_v51  ;;  %v1067_v35 = vsub.s32 4, %v1043_v50  ;;  %vm1284_vm0 = vcmp.eq.s32.totalorder %v1282_v59, 0  ;;  %v875_v13 = vsel %vm873_vm6, %v874_v17, %v2435_v42  ;;  %vm1283_vm5 = vcmp.lt.s32.totalorder %v1282_v59, 2 }
  0xdc   : > { %v1385_v60 = vadd.s32 3, %v967_v15  ;;  %v3305_v31 = vsub.s32 %v1506_v10, %v2738_v1  ;;  %v962_v16 = vxor.u32 2147483648, %v961_v28  ;;  %v3307_v26 = vsub.s32 %v1041_v5, %v1044_v38 }
  0xdd   : > { %v1068_v27 = vsel %vm983_vm8, %v1067_v35, %v1043_v50  ;;  %v1289_v11 = vsel %vm1287_vm15, %v874_v17, %v2435_v42  ;;  %v872_v46 = vsel %vm870_vm7, %v2433_v34, %v871_v61  ;;  %v1286_v19 = vsel %vm1284_vm0, %v2433_v34, %v871_v61 }
  0xde   : > { %v1517_v29 = vrot.slane %v1503_v56, %v3305_v31  ;;  %v1569_v62 = vrot.slane %v1555_v12, %v3305_v31  ;;  %v963_v1 = vsel %vm880_vm1, %v962_v16, %v961_v28  ;;  %v1047_v48 = vsub.s32 0, %v3307_v26 }
  0xdf   : > { %v1070_v32 = vsel %vm3282_vm11, 0, %v1068_v27  ;;  %v3323_v49 = vsel %vm764_vm3, nan, %v1186_v54  ;;  %v966_v18 = vsel %vm3239_vm4, %v2945_v63, %v963_v1  ;;  %v3328_v2 = vand.u32 3, %v1385_v60 }
  0xe0   : > { %v1519_v44 = vcombine.high %v1517_v29, %v1517_v29  ;;  %v1571_v56 = vcombine.high %v1569_v62, %v1569_v62  ;;  %v876_v34 = vsel %vm869_vm9, %v872_v46, %v875_v13  ;;  %2436 = vcosq.f32 %v966_v18 }
  0xe1   : > { %v2295_v30 = vmin.u32 %v1047_v48, %v3307_v26  ;;  %v1290_v39 = vsel %vm1283_vm5, %v1286_v19, %v1289_v11  ;;  %2438 = vsinq.f32 %v966_v18  ;;  %v1489_v14 = vadd.s32 3, %v1070_v32 }
  0xe2   : > { %v3335_v5 = vrot.slane %v1519_v44, %v3305_v31  ;;  %v3338_v24 = vrot.slane %v1517_v29, %v3305_v31  ;;  %v1037_v42 = vadd.s32 %v3246_v37, %v3230_v20  ;;  %v3343_v36 = vrot.slane %v1571_v56, %v3305_v31 }
  0xe3   : > { %v1049_v45 = vclz %v2295_v30  ;;  %v3346_v58 = vrot.slane %v1569_v62, %v3305_v31  ;;  %v3350_v59 = vsel %vm867_vm14, nan, %v876_v34  ;;  %v3354_v33 = vsel %vm867_vm14, nan, %v1290_v39 }
  0xe4   : > { %v1551_v25 = vcombine.high %v3335_v5, %v3335_v5  ;;  %v3362_v20 = vcombine.low %v649_v41, %v650_v23  ;;  %v3364_v15 = vand.u32 3, %v1070_v32  ;;  %v1603_v47 = vcombine.high %v3343_v36, %v3343_v36 }
  0xe5   : > { %v2296_v37 = vadd.s32 4294967294, %v1049_v45  ;;  %v3372_v22 = vrot.slane %v1502_v21, %v3305_v31  ;;  %vm976_vm1 = vcmp.eq.s32.totalorder %v3294_v40, 2  ;;  %vm1391_vm3 = vcmp.eq.s32.totalorder %v3328_v2, 2 }
  0xe6   : > { %v3376_v52 = vand.u32 3, %v1489_v14  ;;  %v3379_v6 = vrot.slane %v1551_v25, %v2745_v4  ;;  %v3382_v41 = vrot.slane %v1551_v25, %v2742_v3  ;;  %v1549_v23 = vcombine.high %v3338_v24, %v3338_v24 }
  0xe7   : > { %vm973_vm4 = vcmp.eq.s32.totalorder %v3294_v40, 0  ;;  %vm2297_vm6 = vcmp.lt.s32.totalorder %v2296_v37, 0  ;;  %vm1388_vm13 = vcmp.eq.s32.totalorder %v3328_v2, 0  ;;  %v3389_v55 = vrot.slane %v1603_v47, %v2745_v4 }
  0xe8   : > { %v1775_v0 = vrot.slane %v1603_v47, %v2742_v3  ;;  %v1601_v21 = vcombine.high %v3346_v58, %v3346_v58  ;;  %vm972_vm7 = vcmp.lt.s32.totalorder %v3294_v40, 2  ;;  %v1052_v17 = vsel %vm2297_vm6, 0, %v2296_v37 }
  0xe9   : > { %vm1387_vm2 = vcmp.lt.s32.totalorder %v3328_v2, 2  ;;  %v1713_v7 = vmul.f32 %v3379_v6, %v3350_v59  ;;  %v3400_v9 = vmul.f32 %v3379_v6, %v3354_v33  ;;  %v1712_v43 = vmul.f32 %v3382_v41, %v3292_v53 }
  0xea   : > { %vm970_vm10 = vweird.f32 %v2945_v63  ;;  %v1053_v50 = vsub.s32 32, %v1052_v17  ;;  %v1054_v54 = vshll.u32 %v3307_v26, %v1052_v17  ;;  %v1057_v61 = vsub.s32 4294967266, %v1052_v17 }
  0xeb   : > { %v1825_v10 = vmul.f32 %v3389_v55, %v3354_v33  ;;  %v3410_v12 = vmul.f32 %v3389_v55, %v3350_v59  ;;  %v1824_v51 = vmul.f32 %v1775_v0, %v3323_v49  ;;  %v3414_v28 = vmul.f32 %v1775_v0, %v3292_v53 }
  0xec   : > { %v3418_v38 = vmul.f32 %v3382_v41, %v3323_v49  ;;  %v1055_v35 = vshrl.u32 %v1037_v42, %v1053_v50  ;;  %v1058_v13 = vadd.s32 127, %v1057_v61  ;;  %v3421_v60 = vrot.slane %v1549_v23, %v2745_v4 }
  0xed   : > { %v3424_v16 = vrot.slane %v1601_v21, %v2745_v4  ;;  %v3426_v26 = vadd.f32 %v1825_v10, %v1713_v7  ;;  %v1655_v27 = vrot.slane %v1549_v23, %v2742_v3  ;;  %v1767_v11 = vrot.slane %v1601_v21, %v2742_v3  ;;  %v2437_v48 = vpop.eup %2436 }
  0xee   : > { %v3432_v46 = vrot.slane %v3335_v5, %v2745_v4  ;;  %v1056_v19 = vor.u32 %v1055_v35, %v1054_v54  ;;  %v1059_v29 = vshll.u32 %v1058_v13, 23  ;;  %v1709_v62 = vmul.f32 %v3421_v60, %v3350_v59  ;;  %v2439_v34 = vpop.eup %2438 }
  0xef   : > { %v1821_v1 = vmul.f32 %v3424_v16, %v3354_v33  ;;  %v3440_v18 = vadd.f32 %v1824_v51, %v1712_v43  ;;  %v3446_v56 = vmul.f32 %v3424_v16, %v3350_v59  ;;  %v977_v30 = vxor.u32 2147483648, %v2437_v48 }
  0xf0   : > { %v1060_v39 = vor.u32 4788187, %v1059_v29  ;;  %v1063_v14 = vcvt.s32.f32 %v1056_v19  ;;  %v3450_v42 = vmul.f32 %v3421_v60, %v3354_v33  ;;  %v974_v45 = vxor.u32 2147483648, %v2439_v34 }
  0xf1   : > { %v1708_v25 = vmul.f32 %v1655_v27, %v3292_v53  ;;  %v1820_v37 = vmul.f32 %v1767_v11, %v3323_v49  ;;  %v3455_v47 = vmul.f32 %v1767_v11, %v3292_v53  ;;  %v978_v23 = vsel %vm976_vm1, %v977_v30, %v2439_v34 }
  0xf2   : > { %v1061_v21 = vand.u32 2147483647, %v1060_v39  ;;  %v1393_v17 = vsel %vm1391_vm3, %v977_v30, %v2439_v34  ;;  %v3461_v7 = vadd.f32 %v1821_v1, %v1709_v62  ;;  %v975_v43 = vsel %vm973_vm4, %v2437_v48, %v974_v45 }
  0xf3   : > { %3984 = vst [vmem:[#allocation12_spill] sm:$0xff] %v3455_v47  ;;  %v1390_v50 = vsel %vm1388_vm13, %v2437_v48, %v974_v45  ;;  %v3468_v54 = vmul.f32 %v1655_v27, %v3323_v49  ;;  %v3472_v61 = vrot.slane %v3343_v36, %v2745_v4  ;;  %v979_v10 = vsel %vm972_vm7, %v975_v43, %v978_v23 }
  0xf4   : > { %v1064_v51 = vmul.f32 %v1063_v14, %v1061_v21  ;;  %v1394_v35 = vsel %vm1387_vm2, %v1390_v50, %v1393_v17  ;;  %v1647_v13 = vrot.slane %v3335_v5, %v2742_v3  ;;  %v3482_v19 = vsel %vm970_vm10, nan, %v979_v10 }
  0xf5   : > { %3985 = vst [vmem:[#allocation13_spill] sm:$0xff] %v3468_v54  ;;  %v3486_v29 = vsel %vm970_vm10, nan, %v1394_v35  ;;  %v1759_v62 = vrot.slane %v3343_v36, %v2742_v3  ;;  %v1705_v40 = vmul.f32 %v3432_v46, %v3350_v59  ;;  %v1714_v2 = vmul.f32 %v3382_v41, %v3482_v19 }
  0xf6   : > { %v1065_v1 = vxor.u32 2147483648, %v1064_v51  ;;  %v1826_v5 = vmul.f32 %v1775_v0, %v3486_v29  ;;  %v3496_v48 = vmul.f32 %v1775_v0, %v3482_v19  ;;  %v3500_v63 = vmul.f32 %v3382_v41, %v3486_v29 }
  0xf7   : > { %v1710_v34 = vmul.f32 %v1655_v27, %v3482_v19  ;;  %v1822_v36 = vmul.f32 %v1767_v11, %v3486_v29  ;;  %v3505_v30 = vmul.f32 %v1767_v11, %v3482_v19  ;;  %v3510_v14 = vmul.f32 %v1655_v27, %v3486_v29 }
  0xf8   : > { %v1066_v39 = vsel %vm983_vm8, %v1065_v1, %v1064_v51  ;;  %v1706_v0 = vmul.f32 %v1647_v13, %v3482_v19  ;;  %v1817_v45 = vmul.f32 %v3472_v61, %v3354_v33  ;;  %v3520_v11 = vadd.f32 %v1820_v37, %v1708_v25 }
  0xf9   : > { %v1069_v41 = vsel %vm3282_vm11, %v2977_v57, %v1066_v39  ;;  %v1818_v21 = vmul.f32 %v1759_v62, %v3486_v29  ;;  %v3523_v17 = vadd.f32 %v1826_v5, %v1714_v2  ;;  %v3529_v50 = vadd.f32 %v1822_v36, %v1710_v34 }
  0xfa   : > { %2440 = vcosq.f32 %v1069_v41  ;;  %v3534_v25 = vmul.f32 %v1759_v62, %v3482_v19  ;;  %v3539_v10 = vmul.f32 %v1647_v13, %v3486_v29  ;;  %v3541_v51 = vadd.f32 %v1817_v45, %v1705_v40 }
  0xfb   : > { %2442 = vsinq.f32 %v1069_v41  ;;  %v3536_v37 = vadd.f32 %v1818_v21, %v1706_v0  ;;  %v3545_v35 = vmul.f32 %v3472_v61, %v3350_v59  ;;  %v3549_v1 = vmul.f32 %v3432_v46, %v3354_v33 }
  0xfc   : > { %3986 = vst [vmem:[#allocation14_spill] sm:$0xff] %v3534_v25  ;;  %3988 = vst [vmem:[#allocation16_spill] sm:$0xff] %v3539_v10  ;;  %v1704_v2 = vmul.f32 %v1647_v13, %v3292_v53  ;;  %v3554_v5 = vrot.slane %v3338_v24, %v2745_v4  ;;  %v3558_v34 = vrot.slane %v3346_v58, %v2745_v4  ;;  %vm1079_vm8 = vcmp.eq.s32.totalorder %v3364_v15, 2 }
  0xfd   : > { %3987 = vst [vmem:[#allocation15_spill] sm:$0xff] %v3536_v37  ;;  %3989 = vst [vmem:[#allocation17_spill] sm:$0xff] %v3541_v51  ;;  %v1816_v40 = vmul.f32 %v1759_v62, %v3323_v49  ;;  %v3562_v36 = vmul.f32 %v1759_v62, %v3292_v53  ;;  %v1639_v39 = vrot.slane %v3338_v24, %v2742_v3  ;;  %vm1495_vm9 = vcmp.eq.s32.totalorder %v3376_v52, 2 }
  0xfe   : > { %v1751_v0 = vrot.slane %v3346_v58, %v2742_v3  ;;  %v3571_v45 = vmul.f32 %v1647_v13, %v3323_v49  ;;  %v1701_v41 = vmul.f32 %v3554_v5, %v3350_v59  ;;  %v1813_v62 = vmul.f32 %v3558_v34, %v3354_v33 }
  0xff   : > { %v3579_v21 = vmul.f32 %v3558_v34, %v3350_v59  ;;  %vm1076_vm11 = vcmp.eq.s32.totalorder %v3364_v15, 0  ;;  %vm1492_vm12 = vcmp.eq.s32.totalorder %v3376_v52, 0  ;;  %v1702_v24 = vmul.f32 %v1639_v39, %v3482_v19 }
 0x100   : > { %v1814_v58 = vmul.f32 %v1751_v0, %v3486_v29  ;;  %v3586_v13 = vmul.f32 %v1751_v0, %v3482_v19  ;;  %v3589_v43 = vmul.f32 %v1639_v39, %v3486_v29  ;;  %vm1075_vm14 = vcmp.lt.s32.totalorder %v3364_v15, 2 }
 0x101   : > { %3990 = vst [vmem:[#allocation18_spill] sm:$0xff] %v3579_v21  ;;  %vm1491_vm15 = vcmp.lt.s32.totalorder %v3376_v52, 2  ;;  %v3597_v8 = vmul.f32 %v3554_v5, %v3354_v33  ;;  %v1700_v44 = vmul.f32 %v1639_v39, %v3292_v53  ;;  %v1812_v32 = vmul.f32 %v1751_v0, %v3323_v49 }
 0x102   : > { %3991 = vst [vmem:[#allocation19_spill] sm:$0xff] %v3586_v13  ;;  %3992 = vst [vmem:[#allocation20_spill] sm:$0xff] %v3589_v43  ;;  %vm1073_vm0 = vweird.f32 %v2977_v57  ;;  %v3604_v51 = vadd.f32 %v1816_v40, %v1704_v2  ;;  %v3607_v37 = vmul.f32 %v1751_v0, %v3292_v53  ;;  %v3610_v23 = vmul.f32 %v1639_v39, %v3323_v49 }
 0x103   : > { %3993 = vst [vmem:[#allocation21_spill] sm:$0xff] %v3597_v8  ;;  %v3614_v25 = vadd.f32 %v1813_v62, %v1701_v41  ;;  %v1518_v54 = vcombine.high %v3372_v22, %v3372_v22  ;;  %v1562_v47 = vrot.slane %v3362_v20, %v3305_v31  ;;  %v3620_v27 = vadd.f32 %v1814_v58, %v1702_v24 }
 0x104   : > { %3994 = vst [vmem:[#allocation22_spill] sm:$0xff] %v3607_v37  ;;  %3995 = vst [vmem:[#allocation23_spill] sm:$0xff] %v3610_v23  ;;  %v1526_v39 = vrot.slane %v3372_v22, %v3305_v31  ;;  %v3628_v0 = vadd.f32 %v1812_v32, %v1700_v44 }
 0x105   : > { %3996 = vst [vmem:[#allocation24_spill] sm:$0xff] %v3614_v25  ;;  %3997 = vst [vmem:[#allocation25_spill] sm:$0xff] %v3620_v27  ;;  %v1540_v41 = vrot.slane %v1518_v54, %v3305_v31  ;;  %v1570_v62 = vcombine.high %v1562_v47, %v1562_v47  ;;  %v3632_v10 = vrot.slane %v1562_v47, %v3305_v31 }
 0x106   : > { %3998 = vst [vmem:[#allocation26_spill] sm:$0xff] %v3628_v0  ;;  %v1548_v24 = vcombine.high %v1526_v39, %v1526_v39  ;;  %v3637_v58 = vrot.slane %v1526_v39, %v2745_v4  ;;  %v3640_v40 = vrot.slane %v1526_v39, %v2742_v3 }
 0x107   : > { %3999 = vst [vmem:[#allocation27_spill] sm:$0xff] %v3632_v10  ;;  %v2441_v2 = vpop.eup %2440  ;;  %v1550_v22 = vcombine.high %v1540_v41, %v1540_v41  ;;  %v3643_v32 = vrot.slane %v1570_v62, %v3305_v31  ;;  %v3647_v44 = vcombine.high %v3632_v10, %v3632_v10  ;;  %v3650_v47 = vrot.slane %v1540_v41, %v2745_v4 }
 0x108   : > { %4000 = vst [vmem:[#allocation28_spill] sm:$0xff] %v3637_v58  ;;  %4001 = vst [vmem:[#allocation29_spill] sm:$0xff] %v3640_v40  ;;  %v2443_v54 = vpop.eup %2442  ;;  %v1080_v20 = vxor.u32 2147483648, %v2441_v2  ;;  %v3653_v23 = vrot.slane %v1548_v24, %v2745_v4  ;;  %v3656_v39 = vrot.slane %v1548_v24, %v2742_v3  ;;  %v3659_v40 = vrot.slane %v1540_v41, %v2742_v3 }
 0x109   : > { %4002 = vst [vmem:[#allocation30_spill] sm:$0xff] %v3643_v32  ;;  %4003 = vst [vmem:[#allocation31_spill] sm:$0xff] %v3650_v47  ;;  %v1077_v31 = vxor.u32 2147483648, %v2443_v54  ;;  %v1602_v62 = vcombine.high %v3643_v32, %v3643_v32  ;;  %v3664_v10 = vrot.slane %v1550_v22, %v2745_v4  ;;  %v3667_v58 = vrot.slane %v1550_v22, %v2742_v3 }
 0x10a   : > { %4004 = vst [vmem:[#allocation32_spill] sm:$0xff] %v3659_v40  ;;  %v1081_v47 = vsel %vm1079_vm8, %v1080_v20, %v2443_v54  ;;  %v1497_v24 = vsel %vm1495_vm9, %v1080_v20, %v2443_v54  ;;  %v3675_v41 = vrot.slane %v3647_v44, %v2745_v4  ;;  %v3679_v40 = vmul.f32 %v3656_v39, %v3482_v19 }
 0x10b   : > { %v1078_v32 = vsel %vm1076_vm11, %v2441_v2, %v1077_v31  ;;  %v1494_v22 = vsel %vm1492_vm12, %v2441_v2, %v1077_v31  ;;  %v1747_v37 = vrot.slane %v1602_v62, %v2745_v4  ;;  %v1698_v0 = vmul.f32 %v3667_v58, %v3482_v19 }
 0x10c   : > { %4005 = vst [vmem:[#allocation33_spill] sm:$0xff] %v3679_v40  ;;  %v1082_v20 = vsel %vm1075_vm14, %v1078_v32, %v1081_v47  ;;  %v1498_v54 = vsel %vm1491_vm15, %v1494_v22, %v1497_v24  ;;  %v1743_v8 = vrot.slane %v1602_v62, %v2742_v3  ;;  %v3695_v40 = vmul.f32 %v3667_v58, %v3486_v29 }
 0x10d   : > { %v3699_v2 = vsel %vm1073_vm0, nan, %v1082_v20  ;;  %v3703_v31 = vsel %vm1073_vm0, nan, %v1498_v54  ;;  %v1697_v15 = vmul.f32 %v3664_v10, %v3350_v59  ;;  %v1809_v52 = vmul.f32 %v1747_v37, %v3354_v33 }
 0x10e   : > { %v1715_v32 = vmul.f32 %v3379_v6, %v3699_v2  ;;  %v1827_v47 = vmul.f32 %v3389_v55, %v3703_v31  ;;  %v1891_v62 = vmul.f32 %v3389_v55, %v3699_v2  ;;  %v1923_v24 = vmul.f32 %v3379_v6, %v3703_v31 }
 0x10f   : > { %v1711_v57 = vmul.f32 %v3421_v60, %v3699_v2  ;;  %v1823_v22 = vmul.f32 %v3424_v16, %v3703_v31  ;;  %v1887_v20 = vmul.f32 %v3424_v16, %v3699_v2  ;;  %v1919_v54 = vmul.f32 %v3421_v60, %v3703_v31 }
 0x110   : > { %v1859_v4 = vadd.f32 %v1827_v47, %v1715_v32  ;;  %v1955_v21 = vsub.f32 %v1891_v62, %v1923_v24  ;;  %v1707_v55 = vmul.f32 %v3432_v46, %v3699_v2  ;;  %v1819_v6 = vmul.f32 %v3472_v61, %v3703_v31 }
 0x111   : > { %v1855_v25 = vadd.f32 %v1823_v22, %v1711_v57  ;;  %v1951_v43 = vsub.f32 %v1887_v20, %v1919_v54  ;;  %v1883_v13 = vmul.f32 %v3472_v61, %v3699_v2  ;;  %v1915_v27 = vmul.f32 %v3432_v46, %v3703_v31  ;;  %v4018_v54 = vld [vmem:[#allocation17_spill] sm:$0xff] }
 0x112   : > { %1957 = vmatprep.subr.mxu0 %v1859_v4  ;;  %2028 = vmatprep.subr.mxu1 %v1955_v21  ;;  %v1851_v16 = vadd.f32 %v1819_v6, %v1707_v55  ;;  %v1703_v60 = vmul.f32 %v3554_v5, %v3699_v2  ;;  %v1815_v32 = vmul.f32 %v3558_v34, %v3703_v31 }
 0x113   : > { %1958 = vmatpush1.msra.mxu0 %v3523_v17  ;;  %v4006_v47 = vsub.f32 %v3496_v48, %v3500_v63  ;;  %v1947_v62 = vsub.f32 %v1883_v13, %v1915_v27  ;;  %v1879_v61 = vmul.f32 %v3558_v34, %v3699_v2  ;;  %v1911_v4 = vmul.f32 %v3554_v5, %v3703_v31 }
 0x114   : > { %1959 = vmatprep.subr.mxu0 %v3426_v26  ;;  %v4007_v46 = vsub.f32 %v3410_v12, %v3400_v9  ;;  %v1847_v21 = vadd.f32 %v1815_v32, %v1703_v60  ;;  %v1699_v17 = vmul.f32 %v3664_v10, %v3699_v2  ;;  %v1811_v48 = vmul.f32 %v1747_v37, %v3703_v31 }
 0x115   : > { %2029 = vmatpush1.msra.mxu1 %v4006_v47  ;;  %1960 = vmatpush1.msra.mxu0 %v3440_v18  ;;  %v4008_v63 = vsub.f32 %v3414_v28, %v3418_v38  ;;  %v1943_v27 = vsub.f32 %v1879_v61, %v1911_v4  ;;  %v3756_v5 = vmul.f32 %v1747_v37, %v3699_v2  ;;  %v4021_v61 = vld [vmem:[#allocation25_spill] sm:$0xff]  ;;  %v4023_v4 = vld [vmem:[#allocation20_spill] sm:$0xff] }
 0x116   : > { %2030 = vmatprep.subr.mxu1 %v4007_v46  ;;  %v1907_v9 = vmul.f32 %v3664_v10, %v3703_v31  ;;  %1961 = vmatprep.subr.mxu0 %v1855_v25  ;;  %v1843_v12 = vadd.f32 %v1811_v48, %v1699_v17  ;;  %v1810_v26 = vmul.f32 %v1743_v8, %v3486_v29  ;;  %v4025_v17 = vld [vmem:[#allocation24_spill] sm:$0xff]  ;;  %v4026_v48 = vld [vmem:[#allocation18_spill] sm:$0xff] }
 0x117   : > { %2031 = vmatpush1.msra.mxu1 %v4008_v63  ;;  %v1874_v34 = vmul.f32 %v1743_v8, %v3482_v19  ;;  %1962 = vmatpush1.msra.mxu0 %v3529_v50  ;;  %v4009_v28 = vsub.f32 %v3505_v30, %v3510_v14  ;;  %v1841_v18 = vadd.f32 %v1809_v52, %v1697_v15  ;;  %v4011_v30 = vld [vmem:[#allocation12_spill] sm:$0xff]  ;;  %v4012_v14 = vld [vmem:[#allocation13_spill] sm:$0xff] }
 0x118   : > { %2032 = vmatprep.subr.mxu1 %v1951_v43  ;;  %v1939_v38 = vsub.f32 %v3756_v5, %v1907_v9  ;;  %v1873_v13 = vmul.f32 %v1747_v37, %v3350_v59  ;;  %1963 = vmatprep.subr.mxu0 %v3461_v7  ;;  %v4010_v43 = vsub.f32 %v3446_v56, %v3450_v42  ;;  %v4016_v15 = vld [vmem:[#allocation16_spill] sm:$0xff]  ;;  %v4027_v63 = vld [vmem:[#allocation21_spill] sm:$0xff] }
 0x119   : > { %2033 = vmatpush1.msra.mxu1 %v4009_v28  ;;  %v1842_v25 = vadd.f32 %v1810_v26, %v1698_v0  ;;  %v1938_v24 = vsub.f32 %v1874_v34, %v3695_v40  ;;  %v1905_v50 = vmul.f32 %v3664_v10, %v3354_v33  ;;  %1964 = vmatpush1.msra.mxu0 %v3520_v11  ;;  %v4014_v10 = vld [vmem:[#allocation15_spill] sm:$0xff]  ;;  %v4015_v0 = vld [vmem:[#allocation14_spill] sm:$0xff]  ;;  %v4029_v5 = vld [vmem:[#allocation33_spill] sm:$0xff] }
 0x11a   : > { %2034 = vmatprep.subr.mxu1 %v4010_v43  ;;  %v4013_v57 = vsub.f32 %v4011_v30, %v4012_v14  ;;  %v1696_v37 = vmul.f32 %v3667_v58, %v3292_v53  ;;  %v1808_v7 = vmul.f32 %v1743_v8, %v3323_v49  ;;  %v1872_v56 = vmul.f32 %v1743_v8, %v3292_v53  ;;  %v4030_v28 = vld [vmem:[#allocation26_spill] sm:$0xff]  ;;  %v4032_v43 = vld [vmem:[#allocation23_spill] sm:$0xff] }
 0x11b   : > { %1965 = vmatprep.subr.mxu0 %v1851_v16  ;;  %v1937_v42 = vsub.f32 %v1873_v13, %v1905_v50  ;;  %v1904_v40 = vmul.f32 %v3667_v58, %v3323_v49  ;;  %v1695_v11 = vmul.f32 %v3653_v23, %v3699_v2  ;;  %v4017_v52 = vsub.f32 %v4015_v0, %v4016_v15  ;;  %v4031_v13 = vld [vmem:[#allocation22_spill] sm:$0xff] }
 0x11c   : > { %2035 = vmatpush1.msra.mxu1 %v4013_v57  ;;  %1966 = vmatpush1.msra.mxu0 %v4014_v10  ;;  %v1840_v22 = vadd.f32 %v1808_v7, %v1696_v37  ;;  %v1807_v20 = vmul.f32 %v3675_v41, %v3703_v31  ;;  %v1871_v8 = vmul.f32 %v3675_v41, %v3699_v2  ;;  %v4034_v37 = vld [vmem:[#allocation31_spill] sm:$0xff] }
 0x11d   : > { %2036 = vmatprep.subr.mxu1 %v1947_v62  ;;  %1967 = vmatprep.subr.mxu0 %v4018_v54  ;;  %v4019_v58 = vsub.f32 %v3545_v35, %v3549_v1  ;;  %v1936_v55 = vsub.f32 %v1872_v56, %v1904_v40  ;;  %v1903_v6 = vmul.f32 %v3653_v23, %v3703_v31  ;;  %v4035_v40 = vld [vmem:[#allocation11_spill] sm:$0xff] }
 0x11e   : > { %2037 = vmatpush1.msra.mxu1 %v4017_v52  ;;  %v1735_v16 = vrot.slane %v3647_v44, %v2742_v3  ;;  %1968 = vmatpush1.msra.mxu0 %v3604_v51  ;;  %v4020_v60 = vsub.f32 %v3562_v36, %v3571_v45  ;;  %v1839_v32 = vadd.f32 %v1807_v20, %v1695_v11  ;;  %v4022_v51 = vld [vmem:[#allocation19_spill] sm:$0xff]  ;;  %v4036_v11 = vld [vmem:[#allocation30_spill] sm:$0xff] }
 0x11f   : > { %2038 = vmatprep.subr.mxu1 %v4019_v58  ;;  %v1902_v47 = vmul.f32 %v3656_v39, %v3486_v29  ;;  %v1693_v35 = vmul.f32 %v3653_v23, %v3350_v59  ;;  %1969 = vmatprep.subr.mxu0 %v1847_v21  ;;  %v1935_v1 = vsub.f32 %v1871_v8, %v1903_v6 }
 0x120   : > { %2039 = vmatpush1.msra.mxu1 %v4020_v60  ;;  %v1806_v62 = vmul.f32 %v1735_v16, %v3486_v29  ;;  %v1870_v44 = vmul.f32 %v1735_v16, %v3482_v19  ;;  %1970 = vmatpush1.msra.mxu0 %v4021_v61  ;;  %v4024_v36 = vsub.f32 %v4022_v51, %v4023_v4  ;;  %v4039_v51 = vld [vmem:[#allocation27_spill] sm:$0xff] }
 0x121   : > { %2040 = vmatprep.subr.mxu1 %v1943_v27  ;;  %v1805_v45 = vmul.f32 %v3675_v41, %v3354_v33  ;;  %v1869_v46 = vmul.f32 %v3675_v41, %v3350_v59  ;;  %v1901_v21 = vmul.f32 %v3653_v23, %v3354_v33  ;;  %1971 = vmatprep.subr.mxu0 %v4025_v17 }
 0x122   : > { %2041 = vmatpush1.msra.mxu1 %v4024_v36  ;;  %v4028_v27 = vsub.f32 %v4026_v48, %v4027_v63  ;;  %v1838_v9 = vadd.f32 %v1806_v62, %v4029_v5  ;;  %v1934_v26 = vsub.f32 %v1870_v44, %v1902_v47  ;;  %v1692_v34 = vmul.f32 %v3656_v39, %v3292_v53  ;;  %v4038_v44 = vld [vmem:[#allocation28_spill] sm:$0xff] }
 0x123   : > { %1972 = vmatpush1.msra.mxu0 %v4030_v28  ;;  %v4033_v41 = vsub.f32 %v4031_v13, %v4032_v43  ;;  %v1837_v50 = vadd.f32 %v1805_v45, %v1693_v35  ;;  %v1933_v23 = vsub.f32 %v1869_v46, %v1901_v21  ;;  %v1804_v30 = vmul.f32 %v1735_v16, %v3323_v49  ;;  %v4040_v21 = vld [vmem:[#allocation29_spill] sm:$0xff] }
 0x124   : > { %2042 = vmatprep.subr.mxu1 %v4028_v27  ;;  %1973 = vmatprep.subr.mxu0 %v1843_v12  ;;  %v1868_v14 = vmul.f32 %v1735_v16, %v3292_v53  ;;  %v1900_v57 = vmul.f32 %v3656_v39, %v3323_v49  ;;  %v1691_v7 = vmul.f32 %v4034_v37, %v3699_v2 }
 0x125   : > { %2043 = vmatpush1.msra.mxu1 %v4033_v41  ;;  %1974 = vmatpush1.msra.mxu0 %v1842_v25  ;;  %v1836_v56 = vadd.f32 %v1804_v30, %v1692_v34  ;;  %v1731_v10 = vrot.slane %v4036_v11, %v4035_v40  ;;  %v1899_v0 = vmul.f32 %v4034_v37, %v3703_v31 }
 0x126   : > { %2044 = vmatprep.subr.mxu1 %v1939_v38  ;;  %1975 = vmatprep.subr.mxu0 %v1841_v18  ;;  %v1932_v12 = vsub.f32 %v1868_v14, %v1900_v57  ;;  %v4037_v38 = vld [vmem:[#allocation32_spill] sm:$0xff]  ;;  %v1727_v39 = vrot.slane %v4036_v11, %v2742_v3  ;;  %v1689_v20 = vmul.f32 %v4034_v37, %v3350_v59 }
 0x127   : > { %2045 = vmatpush1.msra.mxu1 %v1938_v24  ;;  %v1690_v15 = vmul.f32 %v4037_v38, %v3482_v19  ;;  %1976 = vmatpush1.msra.mxu0 %v1840_v22  ;;  %v1803_v25 = vmul.f32 %v1731_v10, %v3703_v31  ;;  %v1867_v24 = vmul.f32 %v1731_v10, %v3699_v2 }
 0x128   : > { %2046 = vmatprep.subr.mxu1 %v1937_v42  ;;  %v1898_v52 = vmul.f32 %v4037_v38, %v3486_v29  ;;  %1977 = vmatprep.subr.mxu0 %v1839_v32  ;;  %v1802_v18 = vmul.f32 %v1727_v39, %v3486_v29  ;;  %v1866_v42 = vmul.f32 %v1727_v39, %v3482_v19 }
 0x129   : > { %2047 = vmatpush1.msra.mxu1 %v1936_v55  ;;  %1978 = vmatpush1.msra.mxu0 %v1838_v9  ;;  %v1835_v22 = vadd.f32 %v1803_v25, %v1691_v7  ;;  %v1931_v8 = vsub.f32 %v1867_v24, %v1899_v0  ;;  %v1801_v54 = vmul.f32 %v1731_v10, %v3354_v33 }
 0x12a   : > { %2048 = vmatprep.subr.mxu1 %v1935_v1  ;;  %1979 = vmatprep.subr.mxu0 %v1837_v50  ;;  %v1834_v58 = vadd.f32 %v1802_v18, %v1690_v15  ;;  %v1930_v55 = vsub.f32 %v1866_v42, %v1898_v52  ;;  %v1865_v6 = vmul.f32 %v1731_v10, %v3350_v59 }
 0x12b   : > { %2049 = vmatpush1.msra.mxu1 %v1934_v26  ;;  %1980 = vmatpush1.msra.mxu0 %v1836_v56  ;;  %v1833_v16 = vadd.f32 %v1801_v54, %v1689_v20  ;;  %v1897_v60 = vmul.f32 %v4034_v37, %v3354_v33  ;;  %v1688_v32 = vmul.f32 %v4037_v38, %v3292_v53 }
 0x12c   : > { %2050 = vmatprep.subr.mxu1 %v1933_v23  ;;  %1981 = vmatprep.subr.mxu0 %v1835_v22  ;;  %v1800_v47 = vmul.f32 %v1727_v39, %v3323_v49  ;;  %v1864_v35 = vmul.f32 %v1727_v39, %v3292_v53  ;;  %v1896_v1 = vmul.f32 %v4037_v38, %v3323_v49 }
 0x12d   : > { %2051 = vmatpush1.msra.mxu1 %v1932_v12  ;;  %1982 = vmatpush1.msra.mxu0 %v1834_v58  ;;  %v1929_v62 = vsub.f32 %v1865_v6, %v1897_v60  ;;  %v1687_v61 = vmul.f32 %v4038_v44, %v3699_v2  ;;  %v1723_v4 = vrot.slane %v4039_v51, %v4035_v40 }
 0x12e   : > { %2052 = vmatprep.subr.mxu1 %v1931_v8  ;;  %1983 = vmatprep.subr.mxu0 %v1833_v16  ;;  %v1832_v36 = vadd.f32 %v1800_v47, %v1688_v32  ;;  %v1928_v45 = vsub.f32 %v1864_v35, %v1896_v1  ;;  %v1895_v46 = vmul.f32 %v4038_v44, %v3703_v31 }
 0x12f   : > { %2053 = vmatpush1.msra.mxu1 %v1930_v55  ;;  %v1686_v17 = vmul.f32 %v4040_v21, %v3482_v19  ;;  %v1799_v48 = vmul.f32 %v1723_v4, %v3703_v31  ;;  %v1863_v63 = vmul.f32 %v1723_v4, %v3699_v2  ;;  %v1719_v27 = vrot.slane %v4039_v51, %v2742_v3 }
 0x130   : > { %2054 = vmatprep.subr.mxu1 %v1929_v62  ;;  %v1894_v5 = vmul.f32 %v4040_v21, %v3486_v29  ;;  %1984 = vmatpush1.msra.mxu0 %v1832_v36  ;;  %v1685_v9 = vmul.f32 %v4038_v44, %v3350_v59  ;;  %v1797_v26 = vmul.f32 %v1723_v4, %v3354_v33 }
 0x131   : > { %2055 = vmatpush1.msra.mxu1 %v1928_v45  ;;  %v1861_v34 = vmul.f32 %v1723_v4, %v3350_v59  ;;  %v1831_v28 = vadd.f32 %v1799_v48, %v1687_v61  ;;  %v1927_v13 = vsub.f32 %v1863_v63, %v1895_v46  ;;  %v1798_v31 = vmul.f32 %v1719_v27, %v3486_v29 }
 0x132   : > { %v1862_v2 = vmul.f32 %v1719_v27, %v3482_v19  ;;  %v1829_v3 = vadd.f32 %v1797_v26, %v1685_v9  ;;  %v1893_v43 = vmul.f32 %v4038_v44, %v3354_v33  ;;  %v1684_v41 = vmul.f32 %v4040_v21, %v3292_v53  ;;  %v1956_v33 = vld [vmem:[%s2732_s20] sm:$0xff] }
 0x133   : > { %v1796_v50 = vmul.f32 %v1719_v27, %v3323_v49  ;;  %1985 = vmatprep.subr.mxu0 %v1831_v28  ;;  %2056 = vmatprep.subr.mxu1 %v1927_v13  ;;  %v1830_v23 = vadd.f32 %v1798_v31, %v1686_v17  ;;  %v1860_v30 = vmul.f32 %v1719_v27, %v3292_v53 }
 0x134   : > { %v1926_v59 = vsub.f32 %v1862_v2, %v1894_v5  ;;  %v1925_v29 = vsub.f32 %v1861_v34, %v1893_v43  ;;  %v1892_v19 = vmul.f32 %v4040_v21, %v3323_v49 }
 0x135   : > { %v1828_v14 = vadd.f32 %v1796_v50, %v1684_v41  ;;  %1986 = vmatpush1.msra.mxu0 %v1830_v23 }
 0x136   : > { %2057 = vmatpush1.msra.mxu1 %v1926_v59  ;;  %1987 = vmatprep.subr.mxu0 %v1829_v3  ;;  %v1924_v57 = vsub.f32 %v1860_v30, %v1892_v19 }
 0x137   : > { %2058 = vmatprep.subr.mxu1 %v1925_v29  ;;  %1988 = vmatpush1.msra.mxu0 %v1828_v14 }
 0x138   : > { %2059 = vmatpush1.msra.mxu1 %v1924_v57  ;;  %2022 = vmatmul.mubr.f32.vlgmr.msra.gmra.mxu0 %v1956_v33 }
 0x139   : > { %2093 = vmatmul.mubr.f32.vlgmr.msra.gmra.mxu1 %v1956_v33 }
 0x1f8   : > { %v2023_v37 = vpop.f32.mrf.mxu0 }
 0x1f9   : > { %v2111_v7 = vrot.slane %v2023_v37, 4  ;;  %v2094_v53 = vpop.f32.mrf.mxu1 }
 0x1fa   : > { %v2101_v56 = vrot.slane %v2094_v53, 4  ;;  %v2025_v40 = vpop.f32.mrf.mxu0 }
 0x1fb   : > { %v2115_v11 = vadd.f32 %v2111_v7, %v2094_v53  ;;  %v2112_v10 = vrot.slane %v2025_v40, 4  ;;  %v2096_v49 = vpop.f32.mrf.mxu1 }
 0x1fc   : > { %v2105_v0 = vsub.f32 %v2023_v37, %v2101_v56  ;;  %v2102_v12 = vrot.slane %v2096_v49, 4 }
 0x1fd   : > { %v2119_v38 = vrot.slane %v2115_v11, 4  ;;  %v2116_v15 = vadd.f32 %v2112_v10, %v2096_v49 }
 0x1fe   : > { %2107 = vst [vmem:[%s214_s27] sm:$0xf] %v2105_v0  ;;  %v2106_v39 = vsub.f32 %v2025_v40, %v2102_v12 }
 0x1ff   : > { %2123 = vst [vmem:[%s214_s27] sm:$0xf0] %v2119_v38  ;;  %v2120_v25 = vrot.slane %v2116_v15, 4 }
 0x200   : > { %2108 = vst [vmem:[%s214_s27 + $0x8] sm:$0xf] %v2106_v39 }
 0x201   : > { %2124 = vst [vmem:[%s214_s27 + $0x8] sm:$0xf0] %v2120_v25 }
 0x202   : > { %2513 = shalt.err (!%p2510_p6)
}
 0x203   : > { %s2514_s15 = scalar_lea.hbm %s3900_s7, 256  ;;  %s2518_s19 = scalar_lea.hbm %s3944_s2, 512 }
 0x204   : > { %p2515_p7 = scmp.ne.s32.totalorder %s3900_s7, %s2514_s15  ;;  %p2519_p4 = scmp.lt.s32.totalorder %s3900_s7, %s3944_s2 }
 0x205   : > { %p2520_p10 = scmp.lt.s32.totalorder %s2518_s19, %s2514_s15 }
 0x206   : > { %p2516_p1 = pnand %p2515_p7, %p2663_p9 }
 0x207   : > { %p2521_p8 = por %p2520_p10, %p2519_p4 }
 0x208   : > { %p2517_p2 = pneg %p2516_p1 }
 0x20a   : > { %p2522_p0 = pnand %p2521_p8, %p2517_p2 }
 0x20c   : > { %2525 = shalt.err (!%p2522_p0)
}
 0x20d   : > { %2349 = dma.vmem_to_hbm [thread:$0]  (%p2663_p9), %s2143_s28, 256, %s3900_s7, %s2126_s8  }
 0x20e PF: > { %s2154_s20 = sand.u32 1, %s2564_s9   ;;  %p4041_p3 = scmp.ge.s32.totalorder %s2584_s14, 2 }
 0x20f   : > { %s2155_s21 = scalar_lea.sflag [#allocation4], %s2154_s20 }
 0x210   : > { %p2359_p13 = pnand %p4041_p3, %p2670_p11 }
 0x212   : > { %p2360_p5 = pneg %p2359_p13 }
 0x214   : > { %2559 = dma.done.wait (%p2360_p5), %s2155_s21, 256  }
 0x215   : > { %2561 = vsyncadd (%p2360_p5), %s2155_s21, 4294967040  ;;  %s21_s14 = sadd.s32 1, %s2584_s14   ;;  %s4042_s9 = smov %s2568_s10 }
 0x216   : > { %p18_p12 = scmp.ge.s32.totalorder %s21_s14, 4   ;;  %s4043_s10 = smov %s2572_s11 }
 0x217   : > { %s4044_s11 = smov %s2668_s23  ;;  %s4045_s12 = smov %s2580_s13 }
 0x218   : > { %s4046_s13 = smov %s4048_s17  ;;  %20 = sbr.rel (!%p18_p12) target bundleno = 8 (0x8), region = 87 }
 0x21d   :  { %2160 = vsyncpa [#allocation3], 1 }
 0x21e   :  { %2162 = vsyncpa [#allocation3 + $0x1], 1 }
 0x21f   :  { %2163 = vsyncpa [#allocation6], 1 }
 0x220   :  { %2165 = vsyncpa [#allocation6 + $0x1], 1 }
 0x221   :  { %2166 = vsyncpa [#allocation4], 1 }
 0x222   :  { %2168 = vsyncpa [#allocation4 + $0x1], 1 }

</bundles_post_ra>
